<compile_context>
chip_gen: v7x
topology: tpu7x:2x2x1
jax: 0.10.0
libtpu: 0.0.40
codegen_flags: <defaults>
</compile_context>

<pallas_src>
import jax
import jax.numpy as jnp
from jax.experimental import pallas as pl
from jax.experimental.pallas import tpu as pltpu

C_IN = 348
C_OUT = 3712
TN = 1920  # lane-multiple block; grid = cdiv(3712, 1920) = 2 (last block partial)


def conv1x1_sigmoid_kernel(x_ref, w_ref, b_ref, o_ref):
    # x_ref: (N, C_IN) bf16, w_ref: (C_IN, TN) bf16, b_ref: (1, TN) f32,
    # o_ref: (N, TN) f32.  Canonical (N,K)x(K,TN) MXU matmul, f32 accumulation.
    y = jnp.dot(x_ref[...], w_ref[...], preferred_element_type=jnp.float32)
    y = y + b_ref[...]
    o_ref[...] = jax.nn.sigmoid(y).astype(o_ref.dtype)


def conv2d_1x1_sigmoid(x_nchw, weight_oc11, bias_o):
    """x_nchw: (N, C_IN, 1, 1); weight: (C_OUT, C_IN, 1, 1); bias: (C_OUT,)."""
    n, c, h, w = x_nchw.shape
    assert (c, h, w) == (C_IN, 1, 1)

    # Activation is tiny (348 values): cast to bf16 to match the MXU operand.
    x2d = x_nchw.reshape(n, c).astype(jnp.bfloat16)            # (N, C_IN)
    # Pre-pack weight once (offline in a real deployment): (C_OUT, C_IN) ->
    # (C_IN, C_OUT) bf16 so each block DMA is plain row-chunks and the kernel
    # needs no transpose.
    w2d = weight_oc11.reshape(C_OUT, C_IN).T.astype(jnp.bfloat16)  # (C_IN, C_OUT)
    b2d = bias_o.reshape(1, C_OUT)                              # (1, C_OUT) f32

    grid = (pl.cdiv(C_OUT, TN),)  # = 2

    cost = pl.CostEstimate(
        flops=2 * n * C_IN * C_OUT,
        bytes_accessed=(C_OUT * C_IN + n * C_IN) * 2 + (C_OUT + n * C_OUT) * 4,
        transcendentals=n * C_OUT,
    )

    out2d = pl.pallas_call(
        conv1x1_sigmoid_kernel,
        out_shape=jax.ShapeDtypeStruct((n, C_OUT), jnp.float32),
        grid_spec=pltpu.PrefetchScalarGridSpec(
            num_scalar_prefetch=0,
            grid=grid,
            in_specs=[
                pl.BlockSpec((n, C_IN), lambda j: (0, 0)),    # activation (tiny, bf16)
                pl.BlockSpec((C_IN, TN), lambda j: (0, j)),   # weight columns, bf16
                pl.BlockSpec((1, TN), lambda j: (0, j)),      # bias slice, f32
            ],
            out_specs=pl.BlockSpec((n, TN), lambda j: (0, j)),
        ),
        compiler_params=pltpu.CompilerParams(
            dimension_semantics=("parallel",),
        ),
        cost_estimate=cost,
    )(x2d, w2d, b2d)

    return out2d.reshape(n, C_OUT, 1, 1)       # back to NCHW


if __name__ == "__main__":
    key = jax.random.PRNGKey(0)
    kx, kw, kb = jax.random.split(key, 3)

    # Shapes fixed by the module: Conv2d(348, 3712, kernel_size=1) on (1, 348, 1, 1).
    x = jax.random.normal(kx, (1, C_IN, 1, 1), dtype=jnp.float32)
    weight = jax.random.normal(kw, (C_OUT, C_IN, 1, 1), dtype=jnp.float32) * 0.02
    bias = jax.random.normal(kb, (C_OUT,), dtype=jnp.float32) * 0.02

    out = conv2d_1x1_sigmoid(x, weight, bias)
    jax.block_until_ready(out)
    assert out.shape == (1, C_OUT, 1, 1)

    # Reference in plain JAX using the same bf16 operand casts (the kernel
    # streams weights/activations in bf16 and accumulates in f32).
    x_bf = x.reshape(1, C_IN).astype(jnp.bfloat16).astype(jnp.float32)
    w_bf = weight.reshape(C_OUT, C_IN).astype(jnp.bfloat16).astype(jnp.float32)
    ref = jax.nn.sigmoid(
        jnp.einsum("nc,oc->no", x_bf, w_bf) + bias[None, :]
    ).reshape(1, C_OUT, 1, 1)
    assert jnp.allclose(out, ref, atol=1e-4, rtol=1e-4)

    # Sanity check vs. the full-f32 math (bf16 weight streaming tolerance).
    ref_f32 = jax.nn.sigmoid(
        jnp.einsum("nc,oc->no", x.reshape(1, C_IN), weight.reshape(C_OUT, C_IN))
        + bias[None, :]
    ).reshape(1, C_OUT, 1, 1)
    assert jnp.max(jnp.abs(out - ref_f32)) < 5e-3

    print("KERNEL_OK")
</pallas_src>

<mosaic_0001>
module attributes {stable_mosaic.version = 11 : i64} {
  func.func @conv1x1_sigmoid_kernel(%arg0: i32, %arg1: memref<1x348xbf16, #tpu.memory_space<vmem>>, %arg2: memref<348x1920xbf16, #tpu.memory_space<vmem>>, %arg3: memref<1x1920xf32, #tpu.memory_space<vmem>>, %arg4: memref<1x1920xf32, #tpu.memory_space<vmem>>) attributes {dimension_semantics = [#tpu.dimension_semantics<parallel>], iteration_bounds = array<i64: 2>, scalar_prefetch = 0 : i64, scratch_operands = 0 : i64, tpu.core_type = #tpu.core_type<tc>, window_params = [{pipeline_mode = #tpu.pipeline_mode<synchronous>, transform_indices = @transform_0, window_bounds = array<i64: 1, 348>}, {transform_indices = @transform_1, window_bounds = array<i64: 348, 1920>}, {transform_indices = @transform_2, window_bounds = array<i64: 1, 1920>}, {transform_indices = @transform_3, window_bounds = array<i64: 1, 1920>}]} {
    %c0 = arith.constant 0 : index
    %c0_0 = arith.constant 0 : index
    %0 = vector.load %arg1[%c0, %c0_0] : memref<1x348xbf16, #tpu.memory_space<vmem>>, vector<1x348xbf16>
    %c0_1 = arith.constant 0 : index
    %c0_2 = arith.constant 0 : index
    %1 = vector.load %arg2[%c0_1, %c0_2] : memref<348x1920xbf16, #tpu.memory_space<vmem>>, vector<348x1920xbf16>
    %cst = arith.constant dense<0.000000e+00> : vector<1x1920xf32>
    %2 = tpu.matmul %0, %1, %cst {dimension_numbers = #tpu.dot_dimension_numbers<[1], [0], [0], [1], [0, 0, 1, 1], [], []>} : vector<1x348xbf16>, vector<348x1920xbf16>, vector<1x1920xf32> -> vector<1x1920xf32>
    %c0_3 = arith.constant 0 : index
    %c0_4 = arith.constant 0 : index
    %3 = vector.load %arg3[%c0_3, %c0_4] : memref<1x1920xf32, #tpu.memory_space<vmem>>, vector<1x1920xf32>
    %4 = arith.addf %2, %3 : vector<1x1920xf32>
    %5 = arith.negf %4 : vector<1x1920xf32>
    %6 = math.exp %5 : vector<1x1920xf32>
    %cst_5 = arith.constant 1.000000e+00 : f32
    %7 = vector.broadcast %cst_5 : f32 to vector<1x1920xf32>
    %8 = arith.addf %7, %6 : vector<1x1920xf32>
    %9 = arith.divf %7, %8 : vector<1x1920xf32>
    %c0_6 = arith.constant 0 : index
    %c0_7 = arith.constant 0 : index
    %10 = vector.load %arg4[%c0_6, %c0_7] : memref<1x1920xf32, #tpu.memory_space<vmem>>, vector<1x1920xf32>
    tpu.vector_store %arg4[%c0_6, %c0_7], %9 {strides = array<i32>} : memref<1x1920xf32, #tpu.memory_space<vmem>>, vector<1x1920xf32>,
    return
  }
  func.func @transform_0(%arg0: i32) -> (i32, i32) {
    %c0_i32 = arith.constant 0 : i32
    %c0_i32_0 = arith.constant 0 : i32
    %c0_i32_1 = arith.constant 0 : i32
    return %c0_i32, %c0_i32_0 : i32, i32
  }
  func.func @transform_1(%arg0: i32) -> (i32, i32) {
    %c0_i32 = arith.constant 0 : i32
    %c0_i32_0 = arith.constant 0 : i32
    return %c0_i32, %arg0 : i32, i32
  }
  func.func @transform_2(%arg0: i32) -> (i32, i32) {
    %c0_i32 = arith.constant 0 : i32
    %c0_i32_0 = arith.constant 0 : i32
    return %c0_i32, %arg0 : i32, i32
  }
  func.func @transform_3(%arg0: i32) -> (i32, i32) {
    %c0_i32 = arith.constant 0 : i32
    %c0_i32_0 = arith.constant 0 : i32
    return %c0_i32, %arg0 : i32, i32
  }
}

</mosaic_0001>

<bundles_post_ra>
// kernel: tpu_custom_call.1
= control target key start
LH: loop header
LB: loop body
LE: loop exit
PB: predicated region body
PF: predicated region fallthrough
CT: control target
= control target key end

     0   :  { %8 = vsyncpa [#allocation3], 0  ;;  %s5426_s0 = inlined_call_operand.hbm [shape: bf16[1,348], index: 0, kind: input, shape index: {}]   ;;  %s5427_s1 = inlined_call_operand.hbm [shape: bf16[348,3712], index: 1, kind: input, shape index: {}]   ;;  %s5428_s2 = inlined_call_operand.hbm [shape: f32[1,3712], index: 2, kind: input, shape index: {}]   ;;  %s5429_s3 = inlined_call_operand.hbm [shape: f32[1,3712], index: 3, kind: output, shape index: {}]  }
   0x1   :  { %9 = vsyncpa [#allocation6], 0 }
   0x2   :  { %11 = vsyncpa [#allocation6 + $0x1], 0 }
   0x3   :  { %12 = vsyncpa [#allocation4], 0 }
   0x4   :  { %14 = vsyncpa [#allocation4 + $0x1], 0  ;;  %s4675_s12 = smov 0   ;;  %s4677_s13 = smov 0  }
   0x5   :  { %s4679_s14 = smov 0   ;;  %s4681_s15 = smov 0  }
   0x6 LB: > { %s4696_s16 = sadd.s32 4294967295, %s4643_s15   ;;  %s3416_s17 = sadd.s32 4294967294, %s4643_s15   ;;  %s4643_s15 = sphi %s4681_s15, %s5452_s15   ;;  %s4639_s14 = sphi %s4679_s14, %s5451_s14   ;;  %s4635_s13 = sphi %s4677_s13, %s5450_s13   ;;  %s4631_s12 = sphi %s4675_s12, %s5449_s12  }
   0x7   : > { %s4700_s18 = sadd.s32 1, %s4643_s15   ;;  %s48_s19 = sadd.s32 1, %s4639_s14 }
   0x8   : > { %s45_s20 = ssub.s32 %s4643_s15, %s4700_s18  ;;  %p55_p0 = scmp.ne.s32.totalorder %s4639_s14, %s4635_s13 }
   0x9   : > { %p46_p1 = scmp.eq.s32.totalorder %s45_s20, 0  ;;  %p56_p2 = scmp.eq.s32.totalorder %s4643_s15, 0 }
   0xa   : > { %p61_p3 = scmp.ne.s32.totalorder %s4635_s13, %s4631_s12  ;;  %p5430_p4 = scmp.eq.s32.totalorder %s4696_s16, 0 }
   0xb   : > { %s4712_s21 = scalar_select %p46_p1, %s4639_s14, %s48_s19  }
   0xc   : > { %p4714_p5 = por %p56_p2, %p55_p0  ;;  %p4720_p6 = por %p5430_p4, %p61_p3 }
   0xd   : > { %p111_p7 = scmp.eq.s32.totalorder %s4696_s16, 1  ;;  %p117_p8 = scmp.eq.s32.totalorder %s3416_s17, 1 }
   0xe   : > { %s5434_s22 = scalar_select %p4714_p5, 1, 0 }
   0xf   : > { %s5435_s23 = scalar_select %p4720_p6, 1, 0 }
  0x10   : > { %p3417_p9 = scmp.ge.s32.totalorder %s4643_s15, 1  ;;  %p124_p10 = scmp.lt.s32.totalorder %s4643_s15, 3 }
  0x11   : > { %p4727_p11 = por %p111_p7, %p55_p0  ;;  %p4731_p12 = por %p117_p8, %p61_p3 }
  0x12   : > { %p4735_p13 = pnand %p3417_p9, %p124_p10  ;;  %s4645_s27 = smov [#allocation2]  }
  0x13   : > { %s5436_s24 = scalar_select %p4727_p11, 1, 0 }
  0x14   : > { %s5437_s25 = scalar_select %p4731_p12, 1, 0 }
  0x15   : > { %s5438_s26 = scalar_select %p4735_p13, 1, 0 }
  0x16   : > { %p3895_p1 = pneg %p4735_p13  ;;  %s137_s28 = sshll.u32 %s4645_s27, 4  ;;  %s138_s28 = int_to_ptr.vmem [resolvable:$true] %s137_s28 }
  0x17   : > { %s4489_s5 = scalar_lea.hbm %s5426_s0, 48 }
  0x18   : > { %p4743_p2 = pnand %p3895_p1, %p5430_p4  ;;  %p4490_p0 = scmp.ne.s32.totalorder %s5426_s0, %s4489_s5 }
  0x19   : > { %p4496_p9 = scmp.lt.u32.totalorder %s4489_s5, %s5426_s0 }
  0x1a   : > { %p4491_p3 = pneg %p4743_p2 }
  0x1c   : > { %p4492_p7 = pnand %p4491_p3, %p4490_p0 }
  0x1e   : > { %p4493_p8 = pneg %p4492_p7 }
  0x20   : > { %p4498_p10 = pnand %p4496_p9, %p4493_p8 }
  0x22   : > { %4501 = shalt.err (!%p4498_p10)
}
  0x23   : > { %s4502_s10 = scalar_lea.vmem %s138_s28, 48  ;;  %s4509_s11 = scalar_lea.vmem %s138_s28, 64 }
  0x24   : > { %p4503_p1 = scmp.ne.s32.totalorder %s138_s28, %s4502_s10  ;;  %p4510_p11 = scmp.lt.s32.totalorder %s138_s28, %s138_s28 }
  0x25   : > { %p4511_p6 = scmp.lt.s32.totalorder %s4509_s11, %s4502_s10 }
  0x26   : > { %p4505_p4 = pnand %p4503_p1, %p4491_p3 }
  0x27   : > { %p4512_p13 = por %p4511_p6, %p4510_p11 }
  0x28   : > { %p4506_p12 = pneg %p4505_p4 }
  0x2a   : > { %p4513_p5 = pnand %p4512_p13, %p4506_p12 }
  0x2c   : > { %4516 = shalt.err (!%p4513_p5)
}
  0x2d   : > { %3898 = dma.hbm_to_vmem [thread:$0]  (!%p4743_p2), %s5426_s0, 48, %s138_s28, [#allocation3]  }
  0x2e   : > { %p5433_p0 = scmp.ge.s32.totalorder %s4643_s15, 2 }
  0x2f   : > { %p5440_p3 = scmp.ne.s32.totalorder (!%p5433_p0), %s5434_s22, 0 }
  0x30   : > { %144 = sbr.rel (%p5433_p0) target bundleno = 127 (0x7f), region = 20 }
  0x37   : > { %147 = sbr.rel (!%p5440_p3) target bundleno = 91 (0x5b), region = 24  ;;  %s148_s20 = sand.u32 (%p5440_p3), 1, %s4643_s15  }
  0x38   : > { %s150_s27 = sand.u32 (%p5440_p3), 1, %s4639_s14   ;;  %s153_s4 = smul.u32 (%p5440_p3), 15, %s4643_s15 }
  0x39   : > { %s3884_s30 = smul.u32 (%p5440_p3), 2640, %s150_s27  ;;  %s4777_s6 = scalar_lea.sflag (%p5440_p3), [#allocation6], %s148_s20 }
  0x3a   : > { %s154_s29 = ssub.s32 (%p5440_p3), 29, %s153_s4 }
  0x3b   : > { %p155_p4 = scmp.lt.s32.totalorder (%p5440_p3), %s154_s29, 15  ;;  %s152_s7 = scalar_lea.vmem (%p5440_p3), [#allocation5], %s3884_s30 }
  0x3e   : > { %s5454_s29 = smov (!%p155_p4, %s154_s29), 15 }
  0x3f   : > { %s4774_s28 = smul.u32 2816, %s5454_s29 }
  0x41   : > { %s159_s5 = ssub.s32 42240, %s4774_s28 }
  0x42   : > { %160 = vsyncadd %s4777_s6, %s159_s5  ;;  %p3420_p5 = scmp.ne.s32.totalorder %s4774_s28, 0  ;;  %s3796_s8 = smul.u32 960, %s4643_s15 }
  0x43   : > { %s3422_s9 = sshll.u32 %s5454_s29, 2  ;;  %s166_s10 = sshll.u32 %s152_s7, 4  ;;  %s4788_s10 = int_to_ptr.vmem [resolvable:$true] %s166_s10 }
  0x44   : > { %s4786_s19 = scalar_lea.hbm %s5427_s1, %s3796_s8  ;;  %s4521_s4 = scalar_lea.hbm %s5427_s1, 81664 }
  0x45   : > { %s4517_s20 = scalar_lea.hbm %s4786_s19, %s4774_s28  ;;  %p4522_p13 = scmp.lt.u32.totalorder %s4786_s19, %s5427_s1 }
  0x46   : > { %p4518_p6 = scmp.ne.s32.totalorder %s4786_s19, %s4517_s20  ;;  %p4523_p2 = scmp.lt.u32.totalorder %s4521_s4, %s4517_s20 }
  0x47   : > { %p4525_p8 = scmp.lt.u32.totalorder %s4517_s20, %s4786_s19 }
  0x48   : > { %p4519_p11 = pnand %p4518_p6, %p3420_p5  ;;  %p4524_p7 = por %p4523_p2, %p4522_p13 }
  0x4a   : > { %p4520_p12 = pneg %p4519_p11  ;;  %p4526_p9 = por %p4525_p8, %p4524_p7 }
  0x4c   : > { %p4527_p10 = pnand %p4526_p9, %p4520_p12 }
  0x4e   : > { %4530 = shalt.err (!%p4527_p10)
}
  0x4f   : > { %s4531_s8 = scalar_lea.vmem %s4788_s10, %s4774_s28  ;;  %s4646_s11 = smov [#allocation5]  }
  0x50   : > { %p4532_p1 = scmp.ne.s32.totalorder %s4788_s10, %s4531_s8  ;;  %s4535_s17 = sshll.u32 %s4646_s11, 4  ;;  %s4536_s17 = int_to_ptr.vmem [resolvable:$false] %s4535_s17 }
  0x51   : > { %s4537_s27 = scalar_lea.vmem %s4536_s17, 84480  ;;  %p4538_p6 = scmp.lt.s32.totalorder %s4788_s10, %s4536_s17 }
  0x52   : > { %p4533_p3 = pnand %p4532_p1, %p3420_p5  ;;  %p4539_p11 = scmp.lt.s32.totalorder %s4537_s27, %s4531_s8 }
  0x54   : > { %p4534_p4 = pneg %p4533_p3  ;;  %p4540_p13 = por %p4539_p11, %p4538_p6 }
  0x56   : > { %p4541_p2 = pnand %p4540_p13, %p4534_p4 }
  0x58   : > { %4544 = shalt.err (!%p4541_p2)
}
  0x59   : > { %s4647_s20 = smov 1856   ;;  %s4648_s30 = smov 960  }
  0x5a   : > { %172 = dma.hbm_to_vmem [thread:$0]  (%p3420_p5), %s4786_s19, %s4774_s28, %s4788_s10, %s4777_s6, %s4647_s20, %s4648_s30, %s3422_s9  }
  0x5b PF: > { %p5441_p12 = scmp.ne.s32.totalorder %s5434_s22, 0 }
  0x5c   : > { %s176_s4 = sand.u32 (%p5441_p12), 1, %s4643_s15   ;;  %s178_s5 = sand.u32 (%p5441_p12), 1, %s4639_s14  }
  0x5d   : > { %175 = sbr.rel (!%p5441_p12) target bundleno = 127 (0x7f), region = 28  ;;  %s4825_s29 = scalar_lea.sflag (%p5441_p12), [#allocation6], %s176_s4 }
  0x5e   : > { %s3885_s7 = smul.u32 (%p5441_p12), 15, %s178_s5 }
  0x5f   : > { %s181_s8 = smul.u32 (%p5441_p12), 15, %s4643_s15 }
  0x60   : > { %s180_s28 = scalar_lea.vmem (%p5441_p12), [#allocation7], %s3885_s7 }
  0x61   : > { %s182_s11 = ssub.s32 (%p5441_p12), 29, %s181_s8 }
  0x62   : > { %p183_p7 = scmp.lt.s32.totalorder (%p5441_p12), %s182_s11, 15 }
  0x64   : > { %s5456_s11 = smov (!%p183_p7, %s182_s11), 15 }
  0x65   : > { %s4822_s17 = sshll.u32 %s5456_s11, 4 }
  0x66   : > { %s187_s27 = ssub.s32 240, %s4822_s17 }
  0x67   : > { %188 = vsyncadd %s4825_s29, %s187_s27  ;;  %p3426_p5 = scmp.ne.s32.totalorder %s4822_s17, 0  ;;  %s3797_s22 = smul.u32 240, %s4643_s15 }
  0x68   : > { %s193_s6 = sshll.u32 %s180_s28, 4  ;;  %s4549_s5 = scalar_lea.hbm %s5428_s2, 464  ;;  %s194_s6 = int_to_ptr.vmem [resolvable:$true] %s193_s6 }
  0x69   : > { %s4833_s19 = scalar_lea.hbm %s5428_s2, %s3797_s22 }
  0x6a   : > { %s4545_s20 = scalar_lea.hbm %s4833_s19, %s4822_s17  ;;  %p4550_p1 = scmp.lt.u32.totalorder %s4833_s19, %s5428_s2 }
  0x6b   : > { %p4546_p8 = scmp.ne.s32.totalorder %s4833_s19, %s4545_s20  ;;  %p4551_p3 = scmp.lt.u32.totalorder %s4549_s5, %s4545_s20 }
  0x6c   : > { %p4553_p6 = scmp.lt.u32.totalorder %s4545_s20, %s4833_s19 }
  0x6d   : > { %p4547_p9 = pnand %p4546_p8, %p3426_p5  ;;  %p4552_p4 = por %p4551_p3, %p4550_p1 }
  0x6f   : > { %p4548_p10 = pneg %p4547_p9  ;;  %p4554_p11 = por %p4553_p6, %p4552_p4 }
  0x71   : > { %p4555_p13 = pnand %p4554_p11, %p4548_p10 }
  0x73   : > { %4558 = shalt.err (!%p4555_p13)
}
  0x74   : > { %s4559_s11 = scalar_lea.vmem %s194_s6, %s4822_s17  ;;  %s4649_s27 = smov [#allocation7]  }
  0x75   : > { %p4560_p2 = scmp.ne.s32.totalorder %s194_s6, %s4559_s11  ;;  %s4563_s28 = sshll.u32 %s4649_s27, 4  ;;  %s4564_s28 = int_to_ptr.vmem [resolvable:$false] %s4563_s28 }
  0x76   : > { %s4565_s22 = scalar_lea.vmem %s4564_s28, 480  ;;  %p4566_p8 = scmp.lt.s32.totalorder %s194_s6, %s4564_s28 }
  0x77   : > { %p4561_p12 = pnand %p4560_p2, %p3426_p5  ;;  %p4567_p9 = scmp.lt.s32.totalorder %s4565_s22, %s4559_s11 }
  0x79   : > { %p4562_p7 = pneg %p4561_p12  ;;  %p4568_p0 = por %p4567_p9, %p4566_p8 }
  0x7b   : > { %p4569_p1 = pnand %p4568_p0, %p4562_p7 }
  0x7d   : > { %4572 = shalt.err (!%p4569_p1)
}
  0x7e   : > { %196 = dma.hbm_to_vmem [thread:$0]  (%p3426_p5), %s4833_s19, %s4822_s17, %s194_s6, %s4825_s29  }
  0x7f PF: > { %p5442_p10 = scmp.ne.s32.totalorder %s5438_s26, 0 }
  0x80   : > { %p5443_p3 = scmp.eq.s32.totalorder (!%p5442_p10), %s4696_s16, 0 }
  0x81   : > { %202 = sbr.rel (%p5442_p10) target bundleno = 765 (0x2fd), region = 32 }
  0x88   : > { %4618 = dma.done.wait (%p5443_p3), [#allocation3], 48   ;;  %p5444_p4 = pmov %p5443_p3 }
  0x89   : > { %s208_s9 = sand.u32 1, %s4696_s16   ;;  %s4864_s10 = sand.u32 1, %s4635_s13  }
  0x8a   : > { %4620 = vsyncadd (%p5444_p4), [#allocation3], 4294967248  ;;  %s3886_s20 = smul.u32 2640, %s4864_s10  ;;  %s209_s17 = scalar_lea.sflag [#allocation6], %s208_s9 }
  0x8b   : > { %p5445_p0 = scmp.ne.s32.totalorder %s5435_s23, 0 }
  0x8c   : > { %s4867_s29 = scalar_lea.vmem [#allocation5], %s3886_s20 }
  0x8d   : > { %4622 = dma.done.wait (%p5445_p0), %s209_s17, 42480  }
  0x8e   : > { %4624 = vsyncadd (%p5445_p0), %s209_s17, 4294924816  ;;  %v4650_v0 = vmov 0   ;;  %v3945_v1 = vld [vmem:[%s4867_s29 + $0x4] ss:$60 sps:$4 sm:$0xff]   ;;  %v3951_v5 = vld [vmem:[%s4867_s29 + $0x7c] ss:$60 sps:$4 sm:$0xff]   ;;  %v632_v15 = vlaneseq }
  0x8f   : > { %2503 = vmatprep.mubr.bf16.mxu1 %v4650_v0  ;;  %v3947_v2 = vld [vmem:[%s4867_s29 + $0x784] ss:$60 sps:$4 sm:$0xff]   ;;  %2430 = vmatprep.subr.bf16.mxu0 %v3945_v1  ;;  %v3953_v6 = vld [vmem:[%s4867_s29 + $0x7fc] ss:$60 sps:$4 sm:$0xff]   ;;  %v3957_v9 = vld [vmem:[%s4867_s29 + $0xf4] ss:$60 sps:$4 sm:$0xff]  }
  0x90   : > { %v3949_v3 = vld [vmem:[%s4867_s29] ss:$60 sps:$4 sm:$0xff]   ;;  %2471 = vmatprep.subr.bf16.mxu1 %v3947_v2  ;;  %v3955_v7 = vld [vmem:[%s4867_s29 + $0x78] ss:$60 sps:$4 sm:$0xff]   ;;  %v3961_v11 = vld [vmem:[%s4867_s29 + $0xf0] ss:$60 sps:$4 sm:$0xff]  }
  0x91   : > { %v3950_v4 = vld [vmem:[%s4867_s29 + $0x780] ss:$60 sps:$4 sm:$0xff]   ;;  %2431 = vmatpush1.bf16.msra.mxu0 %v3949_v3  ;;  %v3956_v8 = vld [vmem:[%s4867_s29 + $0x7f8] ss:$60 sps:$4 sm:$0xff]   ;;  %v3962_v12 = vld [vmem:[%s4867_s29 + $0x870] ss:$60 sps:$4 sm:$0xff]  }
  0x92   : > { %2472 = vmatpush1.bf16.msra.mxu1 %v3950_v4  ;;  %2432 = vmatprep.subr.bf16.mxu0 %v3951_v5  ;;  %v3959_v10 = vld [vmem:[%s4867_s29 + $0x874] ss:$60 sps:$4 sm:$0xff]   ;;  %v4651_v13 = vmov 1966171168   ;;  %v3963_v16 = vld [vmem:[%s4867_s29 + $0x16c] ss:$60 sps:$4 sm:$0xff]  }
  0x93   : > { %2473 = vmatprep.subr.bf16.mxu1 %v3953_v6  ;;  %v630_v14 = vunpack.c.l.s4 %v4651_v13  ;;  %v3965_v17 = vld [vmem:[%s4867_s29 + $0x8ec] ss:$60 sps:$4 sm:$0xff]   ;;  %v4890_v20 = vshrl.u32 %v632_v15, 7  ;;  %v3969_v22 = vld [vmem:[%s4867_s29 + $0x1e4] ss:$60 sps:$4 sm:$0xff]   ;;  %vm2384_vm0 = vcmask 1045504  }
  0x94   : > { %v3967_v18 = vld [vmem:[%s4867_s29 + $0x168] ss:$60 sps:$4 sm:$0xff]   ;;  %v3973_v24 = vld [vmem:[%s4867_s29 + $0x1e0] ss:$60 sps:$4 sm:$0xff]   ;;  %v3979_v33 = vld [vmem:[%s4867_s29 + $0x258] ss:$60 sps:$4 sm:$0xff]  }
  0x95   : > { %2433 = vmatpush1.bf16.msra.mxu0 %v3955_v7  ;;  %v631_v19 = vunpack.c.0.s8 %v630_v14  ;;  %v3968_v21 = vld [vmem:[%s4867_s29 + $0x8e8] ss:$60 sps:$4 sm:$0xff]   ;;  %v3974_v25 = vld [vmem:[%s4867_s29 + $0x960] ss:$60 sps:$4 sm:$0xff]   ;;  %v3981_v36 = vld [vmem:[%s4867_s29 + $0x2d4] ss:$60 sps:$4 sm:$0xff]  }
  0x96   : > { %2474 = vmatpush1.bf16.msra.mxu1 %v3956_v8  ;;  %2434 = vmatprep.subr.bf16.mxu0 %v3957_v9  ;;  %v3971_v23 = vld [vmem:[%s4867_s29 + $0x964] ss:$60 sps:$4 sm:$0xff]   ;;  %v3977_v26 = vld [vmem:[%s4867_s29 + $0x9dc] ss:$60 sps:$4 sm:$0x3f]   ;;  %vm2380_vm1 = vcmask 752640  }
  0x97   : > { %2475 = vmatprep.subr.bf16.mxu1 %v3959_v10  ;;  %v4899_v27 = vsub.s32 %v631_v19, %v4890_v20  ;;  %v3975_v28 = vld [vmem:[%s4867_s29 + $0x25c] ss:$60 sps:$4 sm:$0xff]   ;;  %v3985_v37 = vld [vmem:[%s4867_s29 + $0xc] ss:$60 sps:$4 sm:$0xff]   ;;  %v3991_v42 = vld [vmem:[%s4867_s29 + $0x84] ss:$60 sps:$4 sm:$0xff]  }
  0x98   : > { %v3980_v29 = vld [vmem:[%s4867_s29 + $0x9d8] ss:$60 sps:$4 sm:$0x3f]   ;;  %v3983_v39 = vld [vmem:[%s4867_s29 + $0x8] ss:$60 sps:$4 sm:$0xff]   ;;  %s3887_s23 = smul.u32 15, %s4864_s10 }
  0x99   : > { %2435 = vmatpush1.bf16.msra.mxu0 %v3961_v11  ;;  %v3430_v30 = vld.sshfl [vmem:[#allocation2] sm:$0x13 pattern:$0x75316420]  ;;  %v2386_v35 = vsel %vm2384_vm0, %v3980_v29, 0  ;;  %vm4653_vm2 = vmmov 0  }
  0x9a   : > { %2476 = vmatpush1.bf16.msra.mxu1 %v3962_v12  ;;  %2436 = vmatprep.subr.bf16.mxu0 %v3963_v16  ;;  %v628_v31 = vcombine.high %v3430_v30, %v3430_v30  ;;  %v4904_v32 = vrot.slane %v3430_v30, %v4899_v27  ;;  %v3986_v40 = vld [vmem:[%s4867_s29 + $0x2d0] ss:$60 sps:$4 sm:$0xff]   ;;  %v3989_v43 = vld [vmem:[%s4867_s29 + $0x80] ss:$60 sps:$4 sm:$0xff]   ;;  %v3992_v44 = vld [vmem:[%s4867_s29 + $0x348] ss:$60 sps:$4 sm:$0xff]  }
  0x9b   : > { %2477 = vmatprep.subr.bf16.mxu1 %v3965_v17  ;;  %v3987_v41 = vld [vmem:[%s4867_s29 + $0x34c] ss:$60 sps:$4 sm:$0xff]   ;;  %v3993_v45 = vld [vmem:[%s4867_s29 + $0x3c4] ss:$60 sps:$4 sm:$0xff]   ;;  %v3997_v46 = vld [vmem:[%s4867_s29 + $0xfc] ss:$60 sps:$4 sm:$0xff]  }
  0x9c   : > { %v4908_v34 = vrot.slane %v628_v31, %v4899_v27  ;;  %v4917_v38 = vcombine.high %v4904_v32, %v4904_v32  ;;  %v3995_v47 = vld [vmem:[%s4867_s29 + $0xf8] ss:$60 sps:$4 sm:$0xff]   ;;  %v3998_v48 = vld [vmem:[%s4867_s29 + $0x3c0] ss:$60 sps:$4 sm:$0xff]   ;;  %v4001_v51 = vld [vmem:[%s4867_s29 + $0x170] ss:$60 sps:$4 sm:$0xff]  }
  0x9d   : > { %2437 = vmatpush1.bf16.msra.mxu0 %v3967_v18  ;;  %v3999_v49 = vld [vmem:[%s4867_s29 + $0x43c] ss:$60 sps:$4 sm:$0xff]   ;;  %v4003_v50 = vld [vmem:[%s4867_s29 + $0x174] ss:$60 sps:$4 sm:$0xff]   ;;  %v4009_v54 = vld [vmem:[%s4867_s29 + $0x1ec] ss:$60 sps:$4 sm:$0xff]  }
  0x9e   : > { %2478 = vmatpush1.bf16.msra.mxu1 %v3968_v21  ;;  %2438 = vmatprep.subr.bf16.mxu0 %v3969_v22  ;;  %v4004_v52 = vld [vmem:[%s4867_s29 + $0x438] ss:$60 sps:$4 sm:$0xff]   ;;  %v4007_v55 = vld [vmem:[%s4867_s29 + $0x1e8] ss:$60 sps:$4 sm:$0xff]   ;;  %v4010_v56 = vld [vmem:[%s4867_s29 + $0x4b0] ss:$60 sps:$4 sm:$0xff]  }
  0x9f   : > { %2479 = vmatprep.subr.bf16.mxu1 %v3971_v23  ;;  %2462 = vmatprep.mubr.bf16.mxu0 %v4908_v34  ;;  %v4005_v53 = vld [vmem:[%s4867_s29 + $0x4b4] ss:$60 sps:$4 sm:$0xff]   ;;  %v4011_v57 = vld [vmem:[%s4867_s29 + $0x52c] ss:$60 sps:$4 sm:$0xff]   ;;  %v4015_v58 = vld [vmem:[%s4867_s29 + $0x264] ss:$60 sps:$4 sm:$0xff]  }
  0xa0   : > { %v4013_v59 = vld [vmem:[%s4867_s29 + $0x260] ss:$60 sps:$4 sm:$0xff]   ;;  %v4016_v60 = vld [vmem:[%s4867_s29 + $0x528] ss:$60 sps:$4 sm:$0xff]   ;;  %v4019_v63 = vld [vmem:[%s4867_s29 + $0x2d8] ss:$60 sps:$4 sm:$0xff]  }
  0xa1   : > { %2439 = vmatpush1.bf16.msra.mxu0 %v3973_v24  ;;  %v4017_v61 = vld [vmem:[%s4867_s29 + $0x5a4] ss:$60 sps:$4 sm:$0xff]   ;;  %v4021_v62 = vld [vmem:[%s4867_s29 + $0x2dc] ss:$60 sps:$4 sm:$0xff]   ;;  %v4027_v3 = vld [vmem:[%s4867_s29 + $0x354] ss:$60 sps:$4 sm:$0xff]  }
  0xa2   : > { %2480 = vmatpush1.bf16.msra.mxu1 %v3974_v25  ;;  %2440 = vmatprep.subr.bf16.mxu0 %v3975_v28  ;;  %v4022_v1 = vld [vmem:[%s4867_s29 + $0x5a0] ss:$60 sps:$4 sm:$0xff]   ;;  %v4025_v4 = vld [vmem:[%s4867_s29 + $0x350] ss:$60 sps:$4 sm:$0xff]   ;;  %v4028_v5 = vld [vmem:[%s4867_s29 + $0x618] ss:$60 sps:$4 sm:$0xff]  }
  0xa3   : > { %3761 = vmatprep.subr.msk.bf16.mxu1 %vm2384_vm0, %v3977_v26  ;;  %v4023_v2 = vld [vmem:[%s4867_s29 + $0x61c] ss:$60 sps:$4 sm:$0xff]   ;;  %v4029_v6 = vld [vmem:[%s4867_s29 + $0x694] ss:$60 sps:$4 sm:$0xff]   ;;  %v4033_v7 = vld [vmem:[%s4867_s29 + $0x3cc] ss:$60 sps:$4 sm:$0xff]  }
  0xa4   : > { %v4031_v8 = vld [vmem:[%s4867_s29 + $0x3c8] ss:$60 sps:$4 sm:$0xff]   ;;  %v4034_v9 = vld [vmem:[%s4867_s29 + $0x690] ss:$60 sps:$4 sm:$0xff]   ;;  %v4037_v12 = vld [vmem:[%s4867_s29 + $0x440] ss:$60 sps:$4 sm:$0xff]  }
  0xa5   : > { %2441 = vmatpush1.bf16.msra.mxu0 %v3979_v33  ;;  %v4035_v10 = vld [vmem:[%s4867_s29 + $0x70c] ss:$60 sps:$4 sm:$0xff]   ;;  %v4039_v11 = vld [vmem:[%s4867_s29 + $0x444] ss:$60 sps:$4 sm:$0xff]   ;;  %v4043_v14 = vld [vmem:[%s4867_s29 + $0x4bc] ss:$60 sps:$4 sm:$0xff]  }
  0xa6   : > { %2482 = vmatpush1.bf16.msra.mxu1 %v2386_v35  ;;  %2442 = vmatprep.subr.bf16.mxu0 %v3981_v36  ;;  %v4040_v13 = vld [vmem:[%s4867_s29 + $0x708] ss:$60 sps:$4 sm:$0xff]   ;;  %v4046_v16 = vld [vmem:[%s4867_s29 + $0x14] ss:$60 sps:$4 sm:$0xff]   ;;  %v4056_v28 = vld [vmem:[%s4867_s29 + $0x100] ss:$60 sps:$4 sm:$0xff]  }
  0xa7   : > { %2512 = vmatprep.subr.bf16.mxu1 %v3985_v37  ;;  %v4041_v17 = vld [vmem:[%s4867_s29 + $0x4b8] ss:$60 sps:$4 sm:$0xff]   ;;  %v4044_v18 = vld [vmem:[%s4867_s29 + $0x10] ss:$60 sps:$4 sm:$0xff]   ;;  %v4050_v23 = vld [vmem:[%s4867_s29 + $0x88] ss:$60 sps:$4 sm:$0xff]  }
  0xa8   : > { %v4049_v19 = vld [vmem:[%s4867_s29 + $0x534] ss:$60 sps:$4 sm:$0xff]   ;;  %v4052_v21 = vld [vmem:[%s4867_s29 + $0x8c] ss:$60 sps:$4 sm:$0xff]   ;;  %v4058_v25 = vld [vmem:[%s4867_s29 + $0x104] ss:$60 sps:$4 sm:$0xff]  }
  0xa9   : > { %3762 = vmatmul.mubr.msk.bf16.vlgmr.msra.gmra.mrb[0].mxu1 %vm2380_vm1, %v4917_v38  ;;  %2443 = vmatpush1.bf16.msra.mxu0 %v3986_v40  ;;  %v4047_v22 = vld [vmem:[%s4867_s29 + $0x530] ss:$60 sps:$4 sm:$0xff]   ;;  %v4053_v26 = vld [vmem:[%s4867_s29 + $0x5a8] ss:$60 sps:$4 sm:$0xff]   ;;  %v4064_v30 = vld [vmem:[%s4867_s29 + $0x17c] ss:$60 sps:$4 sm:$0xff]  }
  0xaa   : > { %2513 = vmatpush1.bf16.msra.mxu1 %v3983_v39  ;;  %2444 = vmatprep.subr.bf16.mxu0 %v3987_v41  ;;  %v4055_v24 = vld [vmem:[%s4867_s29 + $0x5ac] ss:$60 sps:$4 sm:$0xff]   ;;  %v4061_v29 = vld [vmem:[%s4867_s29 + $0x624] ss:$60 sps:$4 sm:$0xff]   ;;  %v4062_v33 = vld [vmem:[%s4867_s29 + $0x178] ss:$60 sps:$4 sm:$0xff]  }
  0xab   : > { %2514 = vmatprep.subr.bf16.mxu1 %v3991_v42  ;;  %2544 = vmatprep.mubr.bf16.mxu1 %v4908_v34  ;;  %v4059_v31 = vld [vmem:[%s4867_s29 + $0x620] ss:$60 sps:$4 sm:$0xff]   ;;  %v4070_v36 = vld [vmem:[%s4867_s29 + $0x1f4] ss:$60 sps:$4 sm:$0xff]   ;;  %v4076_v41 = vld [vmem:[%s4867_s29 + $0x26c] ss:$60 sps:$4 sm:$0xff]  }
  0xac   : > { %v4067_v35 = vld [vmem:[%s4867_s29 + $0x69c] ss:$60 sps:$4 sm:$0xff]   ;;  %v4068_v39 = vld [vmem:[%s4867_s29 + $0x1f0] ss:$60 sps:$4 sm:$0xff]   ;;  %s5212_s26 = scalar_lea.vmem [#allocation7], %s3887_s23  ;;  %s5343_s6 = scalar_lea.vmem [#allocation8], %s3887_s23 }
  0xad   : > { %2445 = vmatpush1.bf16.msra.mxu0 %v3992_v44  ;;  %v4065_v37 = vld [vmem:[%s4867_s29 + $0x698] ss:$60 sps:$4 sm:$0xff]   ;;  %v4071_v42 = vld [vmem:[%s4867_s29 + $0x710] ss:$60 sps:$4 sm:$0xff]   ;;  %vm3291_vm3 = vcmp.lt.s32.totalorder %v632_v15, 896  ;;  %s3295_s19 = scalar_lea.sflag [#allocation4], %s4864_s10 }
  0xae   : > { %2515 = vmatpush1.bf16.msra.mxu1 %v3989_v43  ;;  %2446 = vmatprep.subr.bf16.mxu0 %v3993_v45  ;;  %v4073_v40 = vld [vmem:[%s4867_s29 + $0x714] ss:$60 sps:$4 sm:$0xff]   ;;  %v4074_v43 = vld [vmem:[%s4867_s29 + $0x268] ss:$60 sps:$4 sm:$0xff]   ;;  %p5446_p5 = scmp.ne.s32.totalorder %s5436_s24, 0 }
  0xaf   : > { %2516 = vmatprep.subr.bf16.mxu1 %v3997_v46  ;;  %v4079_v44 = vld [vmem:[%s4867_s29 + $0x78c] ss:$60 sps:$4 sm:$0xff]   ;;  %v4082_v45 = vld [vmem:[%s4867_s29 + $0x2e4] ss:$60 sps:$4 sm:$0xff]   ;;  %s3302_s30 = smul.u32 (%p5446_p5), 15, %s4696_s16 }
  0xb0   : > { %v4077_v46 = vld [vmem:[%s4867_s29 + $0x788] ss:$60 sps:$4 sm:$0xff]  }
  0xb1   : > { %2447 = vmatpush1.bf16.msra.mxu0 %v3998_v48  ;;  %v4085_v48 = vld [vmem:[%s4867_s29 + $0x804] ss:$60 sps:$4 sm:$0xff]   ;;  %s3303_s4 = ssub.s32 (%p5446_p5), 29, %s3302_s30 }
  0xb2   : > { %2517 = vmatpush1.bf16.msra.mxu1 %v3995_v47  ;;  %2448 = vmatprep.subr.bf16.mxu0 %v3999_v49  ;;  %v4080_v47 = vld [vmem:[%s4867_s29 + $0x2e0] ss:$60 sps:$4 sm:$0xff]   ;;  %p3304_p6 = scmp.lt.s32.totalorder (%p5446_p5), %s3303_s4, 15 }
  0xb3   : > { %2518 = vmatprep.subr.bf16.mxu1 %v4003_v50  ;;  %v4088_v49 = vld [vmem:[%s4867_s29 + $0x35c] ss:$60 sps:$4 sm:$0xff]  }
  0xb4   : > { %v4083_v50 = vld [vmem:[%s4867_s29 + $0x800] ss:$60 sps:$4 sm:$0xff]  }
  0xb5   : > { %2449 = vmatpush1.bf16.msra.mxu0 %v4004_v52  ;;  %v4091_v52 = vld [vmem:[%s4867_s29 + $0x87c] ss:$60 sps:$4 sm:$0xff]  }
  0xb6   : > { %2519 = vmatpush1.bf16.msra.mxu1 %v4001_v51  ;;  %2450 = vmatprep.subr.bf16.mxu0 %v4005_v53  ;;  %v4086_v51 = vld [vmem:[%s4867_s29 + $0x358] ss:$60 sps:$4 sm:$0xff]  }
  0xb7   : > { %2520 = vmatprep.subr.bf16.mxu1 %v4009_v54  ;;  %v4094_v53 = vld [vmem:[%s4867_s29 + $0x3d4] ss:$60 sps:$4 sm:$0xff]  }
  0xb8   : > { %v4089_v54 = vld [vmem:[%s4867_s29 + $0x878] ss:$60 sps:$4 sm:$0xff]  }
  0xb9   : > { %2451 = vmatpush1.bf16.msra.mxu0 %v4010_v56  ;;  %v4097_v56 = vld [vmem:[%s4867_s29 + $0x8f4] ss:$60 sps:$4 sm:$0xff]  }
  0xba   : > { %2521 = vmatpush1.bf16.msra.mxu1 %v4007_v55  ;;  %2452 = vmatprep.subr.bf16.mxu0 %v4011_v57  ;;  %v4092_v55 = vld [vmem:[%s4867_s29 + $0x3d0] ss:$60 sps:$4 sm:$0xff]  }
  0xbb   : > { %2522 = vmatprep.subr.bf16.mxu1 %v4015_v58  ;;  %v4100_v57 = vld [vmem:[%s4867_s29 + $0x44c] ss:$60 sps:$4 sm:$0xff]  }
  0xbc   : > { %v4095_v58 = vld [vmem:[%s4867_s29 + $0x8f0] ss:$60 sps:$4 sm:$0xff]  }
  0xbd   : > { %2453 = vmatpush1.bf16.msra.mxu0 %v4016_v60  ;;  %v4103_v60 = vld [vmem:[%s4867_s29 + $0x96c] ss:$60 sps:$4 sm:$0xff]  }
  0xbe   : > { %2523 = vmatpush1.bf16.msra.mxu1 %v4013_v59  ;;  %2454 = vmatprep.subr.bf16.mxu0 %v4017_v61  ;;  %v4098_v59 = vld [vmem:[%s4867_s29 + $0x448] ss:$60 sps:$4 sm:$0xff]  }
  0xbf   : > { %2524 = vmatprep.subr.bf16.mxu1 %v4021_v62  ;;  %v4106_v61 = vld [vmem:[%s4867_s29 + $0x4c4] ss:$60 sps:$4 sm:$0xff]  }
  0xc0   : > { %v4101_v62 = vld [vmem:[%s4867_s29 + $0x968] ss:$60 sps:$4 sm:$0xff]  }
  0xc1   : > { %2455 = vmatpush1.bf16.msra.mxu0 %v4022_v1  ;;  %v4107_v1 = vld [vmem:[%s4867_s29 + $0x9e4] ss:$60 sps:$4 sm:$0x3f]  }
  0xc2   : > { %2525 = vmatpush1.bf16.msra.mxu1 %v4019_v63  ;;  %2456 = vmatprep.subr.bf16.mxu0 %v4023_v2  ;;  %v4104_v63 = vld [vmem:[%s4867_s29 + $0x4c0] ss:$60 sps:$4 sm:$0xff]  }
  0xc3   : > { %2526 = vmatprep.subr.bf16.mxu1 %v4027_v3  ;;  %v4111_v2 = vld [vmem:[%s4867_s29 + $0x53c] ss:$60 sps:$4 sm:$0xff]  }
  0xc4   : > { %v4112_v3 = vld [vmem:[%s4867_s29 + $0x9e0] ss:$60 sps:$4 sm:$0x3f]  }
  0xc5   : > { %2457 = vmatpush1.bf16.msra.mxu0 %v4028_v5  ;;  %v2392_v5 = vsel %vm2384_vm0, %v4112_v3, 0  ;;  %v4196_v3 = vld [vmem:[%s4867_s29 + $0x18c] ss:$60 sps:$4 sm:$0xff]  }
  0xc6   : > { %2527 = vmatpush1.bf16.msra.mxu1 %v4025_v4  ;;  %2458 = vmatprep.subr.bf16.mxu0 %v4029_v6  ;;  %v4109_v4 = vld [vmem:[%s4867_s29 + $0x538] ss:$60 sps:$4 sm:$0xff]  }
  0xc7   : > { %2528 = vmatprep.subr.bf16.mxu1 %v4033_v7  ;;  %v4115_v6 = vld [vmem:[%s4867_s29 + $0x5b4] ss:$60 sps:$4 sm:$0xff]   ;;  %v4118_v7 = vld [vmem:[%s4867_s29 + $0x1c] ss:$60 sps:$4 sm:$0xff]  }
  0xc9   : > { %2459 = vmatpush1.bf16.msra.mxu0 %v4034_v9  ;;  %v4116_v9 = vld [vmem:[%s4867_s29 + $0x18] ss:$60 sps:$4 sm:$0xff]  }
  0xca   : > { %2529 = vmatpush1.bf16.msra.mxu1 %v4031_v8  ;;  %2460 = vmatprep.subr.bf16.mxu0 %v4035_v10  ;;  %v4113_v8 = vld [vmem:[%s4867_s29 + $0x5b0] ss:$60 sps:$4 sm:$0xff]  }
  0xcb   : > { %2530 = vmatprep.subr.bf16.mxu1 %v4039_v11  ;;  %v4121_v10 = vld [vmem:[%s4867_s29 + $0x62c] ss:$60 sps:$4 sm:$0xff]   ;;  %v4124_v11 = vld [vmem:[%s4867_s29 + $0x94] ss:$60 sps:$4 sm:$0xff]  }
  0xcd   : > { %2461 = vmatpush1.bf16.msra.mxu0 %v4040_v13  ;;  %v4122_v13 = vld [vmem:[%s4867_s29 + $0x90] ss:$60 sps:$4 sm:$0xff]  }
  0xce   : > { %2531 = vmatpush1.bf16.msra.mxu1 %v4037_v12  ;;  %2594 = vmatprep.subr.bf16.mxu0 %v4046_v16  ;;  %v4119_v12 = vld [vmem:[%s4867_s29 + $0x628] ss:$60 sps:$4 sm:$0xff]  }
  0xcf   : > { %2532 = vmatprep.subr.bf16.mxu1 %v4043_v14  ;;  %v4127_v14 = vld [vmem:[%s4867_s29 + $0x6a4] ss:$60 sps:$4 sm:$0xff]   ;;  %v4130_v16 = vld [vmem:[%s4867_s29 + $0x10c] ss:$60 sps:$4 sm:$0xff]  }
  0xd0   : > { %2463 = vmatmul.mubr.bf16.vlgmr.msra.gmra.mrb[0].mxu0 %v4904_v32 }
  0xd1   : > { %2595 = vmatpush1.bf16.msra.mxu0 %v4044_v18  ;;  %2626 = vmatprep.mubr.bf16.mxu0 %v4908_v34  ;;  %v4128_v18 = vld [vmem:[%s4867_s29 + $0x108] ss:$60 sps:$4 sm:$0xff]  }
  0xd2   : > { %2533 = vmatpush1.bf16.msra.mxu1 %v4041_v17  ;;  %2596 = vmatprep.subr.bf16.mxu0 %v4052_v21  ;;  %v4125_v17 = vld [vmem:[%s4867_s29 + $0x6a0] ss:$60 sps:$4 sm:$0xff]  }
  0xd3   : > { %2534 = vmatprep.subr.bf16.mxu1 %v4049_v19  ;;  %v4133_v19 = vld [vmem:[%s4867_s29 + $0x71c] ss:$60 sps:$4 sm:$0xff]   ;;  %v4136_v21 = vld [vmem:[%s4867_s29 + $0x184] ss:$60 sps:$4 sm:$0xff]  }
  0xd5   : > { %2597 = vmatpush1.bf16.msra.mxu0 %v4050_v23  ;;  %v4134_v23 = vld [vmem:[%s4867_s29 + $0x180] ss:$60 sps:$4 sm:$0xff]  }
  0xd6   : > { %2535 = vmatpush1.bf16.msra.mxu1 %v4047_v22  ;;  %2598 = vmatprep.subr.bf16.mxu0 %v4058_v25  ;;  %v4131_v22 = vld [vmem:[%s4867_s29 + $0x718] ss:$60 sps:$4 sm:$0xff]  }
  0xd7   : > { %2536 = vmatprep.subr.bf16.mxu1 %v4055_v24  ;;  %v4139_v24 = vld [vmem:[%s4867_s29 + $0x794] ss:$60 sps:$4 sm:$0xff]   ;;  %v4142_v25 = vld [vmem:[%s4867_s29 + $0x1fc] ss:$60 sps:$4 sm:$0xff]  }
  0xd9   : > { %2599 = vmatpush1.bf16.msra.mxu0 %v4056_v28  ;;  %v4140_v28 = vld [vmem:[%s4867_s29 + $0x1f8] ss:$60 sps:$4 sm:$0xff]  }
  0xda   : > { %2537 = vmatpush1.bf16.msra.mxu1 %v4053_v26  ;;  %2600 = vmatprep.subr.bf16.mxu0 %v4064_v30  ;;  %v4137_v26 = vld [vmem:[%s4867_s29 + $0x790] ss:$60 sps:$4 sm:$0xff]  }
  0xdb   : > { %2538 = vmatprep.subr.bf16.mxu1 %v4061_v29  ;;  %v4145_v29 = vld [vmem:[%s4867_s29 + $0x80c] ss:$60 sps:$4 sm:$0xff]   ;;  %v4148_v30 = vld [vmem:[%s4867_s29 + $0x274] ss:$60 sps:$4 sm:$0xff]  }
  0xdd   : > { %2601 = vmatpush1.bf16.msra.mxu0 %v4062_v33  ;;  %v4146_v33 = vld [vmem:[%s4867_s29 + $0x270] ss:$60 sps:$4 sm:$0xff]  }
  0xde   : > { %2539 = vmatpush1.bf16.msra.mxu1 %v4059_v31  ;;  %2602 = vmatprep.subr.bf16.mxu0 %v4070_v36  ;;  %v4143_v31 = vld [vmem:[%s4867_s29 + $0x808] ss:$60 sps:$4 sm:$0xff]  }
  0xdf   : > { %2540 = vmatprep.subr.bf16.mxu1 %v4067_v35  ;;  %v4151_v35 = vld [vmem:[%s4867_s29 + $0x884] ss:$60 sps:$4 sm:$0xff]   ;;  %v4154_v36 = vld [vmem:[%s4867_s29 + $0x2ec] ss:$60 sps:$4 sm:$0xff]  }
  0xe1   : > { %2603 = vmatpush1.bf16.msra.mxu0 %v4068_v39  ;;  %v4152_v39 = vld [vmem:[%s4867_s29 + $0x2e8] ss:$60 sps:$4 sm:$0xff]  }
  0xe2   : > { %2541 = vmatpush1.bf16.msra.mxu1 %v4065_v37  ;;  %2604 = vmatprep.subr.bf16.mxu0 %v4076_v41  ;;  %v4149_v37 = vld [vmem:[%s4867_s29 + $0x880] ss:$60 sps:$4 sm:$0xff]  }
  0xe3   : > { %2542 = vmatprep.subr.bf16.mxu1 %v4073_v40  ;;  %v4157_v40 = vld [vmem:[%s4867_s29 + $0x8fc] ss:$60 sps:$4 sm:$0xff]   ;;  %v4160_v41 = vld [vmem:[%s4867_s29 + $0x364] ss:$60 sps:$4 sm:$0xff]  }
  0xe5   : > { %2605 = vmatpush1.bf16.msra.mxu0 %v4074_v43  ;;  %v4158_v43 = vld [vmem:[%s4867_s29 + $0x360] ss:$60 sps:$4 sm:$0xff]  }
  0xe6   : > { %2543 = vmatpush1.bf16.msra.mxu1 %v4071_v42  ;;  %2606 = vmatprep.subr.bf16.mxu0 %v4082_v45  ;;  %v4155_v42 = vld [vmem:[%s4867_s29 + $0x8f8] ss:$60 sps:$4 sm:$0xff]  }
  0xe7   : > { %2553 = vmatprep.subr.bf16.mxu1 %v4079_v44  ;;  %v4163_v44 = vld [vmem:[%s4867_s29 + $0x974] ss:$60 sps:$4 sm:$0xff]   ;;  %v4166_v45 = vld [vmem:[%s4867_s29 + $0x3dc] ss:$60 sps:$4 sm:$0xff]  }
  0xe9   : > { %2545 = vmatmul.mubr.bf16.vlgmr.msra.gmra.mrb[4].mxu1 %v4904_v32  ;;  %2607 = vmatpush1.bf16.msra.mxu0 %v4080_v47  ;;  %v4164_v47 = vld [vmem:[%s4867_s29 + $0x3d8] ss:$60 sps:$4 sm:$0xff]  }
  0xea   : > { %2554 = vmatpush1.bf16.msra.mxu1 %v4077_v46  ;;  %2608 = vmatprep.subr.bf16.mxu0 %v4088_v49  ;;  %v4161_v46 = vld [vmem:[%s4867_s29 + $0x970] ss:$60 sps:$4 sm:$0xff]  }
  0xeb   : > { %2555 = vmatprep.subr.bf16.mxu1 %v4085_v48  ;;  %2585 = vmatprep.mubr.bf16.mxu1 %v4650_v0  ;;  %v4167_v48 = vld [vmem:[%s4867_s29 + $0x9ec] ss:$60 sps:$4 sm:$0x3f]   ;;  %v4171_v49 = vld [vmem:[%s4867_s29 + $0x454] ss:$60 sps:$4 sm:$0xff]  }
  0xed   : > { %2609 = vmatpush1.bf16.msra.mxu0 %v4086_v51  ;;  %v4169_v51 = vld [vmem:[%s4867_s29 + $0x450] ss:$60 sps:$4 sm:$0xff]  }
  0xee   : > { %2556 = vmatpush1.bf16.msra.mxu1 %v4083_v50  ;;  %2610 = vmatprep.subr.bf16.mxu0 %v4094_v53  ;;  %v4172_v50 = vld [vmem:[%s4867_s29 + $0x9e8] ss:$60 sps:$4 sm:$0x3f]  }
  0xef   : > { %2557 = vmatprep.subr.bf16.mxu1 %v4091_v52  ;;  %v2398_v52 = vsel %vm2384_vm0, %v4172_v50, 0  ;;  %v4175_v53 = vld [vmem:[%s4867_s29 + $0x4cc] ss:$60 sps:$4 sm:$0xff]   ;;  %v4256_v50 = vld [vmem:[%s4867_s29 + $0xa4] ss:$60 sps:$4 sm:$0xff]  }
  0xf1   : > { %2611 = vmatpush1.bf16.msra.mxu0 %v4092_v55  ;;  %v4173_v55 = vld [vmem:[%s4867_s29 + $0x4c8] ss:$60 sps:$4 sm:$0xff]  }
  0xf2   : > { %2558 = vmatpush1.bf16.msra.mxu1 %v4089_v54  ;;  %2612 = vmatprep.subr.bf16.mxu0 %v4100_v57  ;;  %v4178_v54 = vld [vmem:[%s4867_s29 + $0x24] ss:$60 sps:$4 sm:$0xff]  }
  0xf3   : > { %2559 = vmatprep.subr.bf16.mxu1 %v4097_v56  ;;  %v4176_v56 = vld [vmem:[%s4867_s29 + $0x20] ss:$60 sps:$4 sm:$0xff]  }
  0xf4   : > { %v4181_v57 = vld [vmem:[%s4867_s29 + $0x544] ss:$60 sps:$4 sm:$0xff]  }
  0xf5   : > { %2613 = vmatpush1.bf16.msra.mxu0 %v4098_v59  ;;  %v4179_v59 = vld [vmem:[%s4867_s29 + $0x540] ss:$60 sps:$4 sm:$0xff]  }
  0xf6   : > { %2560 = vmatpush1.bf16.msra.mxu1 %v4095_v58  ;;  %2614 = vmatprep.subr.bf16.mxu0 %v4106_v61  ;;  %v4184_v58 = vld [vmem:[%s4867_s29 + $0x9c] ss:$60 sps:$4 sm:$0xff]  }
  0xf7   : > { %2561 = vmatprep.subr.bf16.mxu1 %v4103_v60  ;;  %v4182_v60 = vld [vmem:[%s4867_s29 + $0x98] ss:$60 sps:$4 sm:$0xff]  }
  0xf8   : > { %v4187_v61 = vld [vmem:[%s4867_s29 + $0x5bc] ss:$60 sps:$4 sm:$0xff]  }
  0xf9   : > { %2615 = vmatpush1.bf16.msra.mxu0 %v4104_v63  ;;  %v4185_v63 = vld [vmem:[%s4867_s29 + $0x5b8] ss:$60 sps:$4 sm:$0xff]  }
  0xfa   : > { %2562 = vmatpush1.bf16.msra.mxu1 %v4101_v62  ;;  %2616 = vmatprep.subr.bf16.mxu0 %v4111_v2  ;;  %v4190_v62 = vld [vmem:[%s4867_s29 + $0x114] ss:$60 sps:$4 sm:$0xff]  }
  0xfb   : > { %3763 = vmatprep.subr.msk.bf16.mxu1 %vm2384_vm0, %v4107_v1  ;;  %v4188_v1 = vld [vmem:[%s4867_s29 + $0x110] ss:$60 sps:$4 sm:$0xff]  }
  0xfc   : > { %v4193_v2 = vld [vmem:[%s4867_s29 + $0x634] ss:$60 sps:$4 sm:$0xff]  }
  0xfd   : > { %2617 = vmatpush1.bf16.msra.mxu0 %v4109_v4  ;;  %v4191_v4 = vld [vmem:[%s4867_s29 + $0x630] ss:$60 sps:$4 sm:$0xff]  }
  0xfe   : > { %2564 = vmatpush1.bf16.msra.mxu1 %v2392_v5  ;;  %2618 = vmatprep.subr.bf16.mxu0 %v4115_v6  ;;  %v4194_v5 = vld [vmem:[%s4867_s29 + $0x188] ss:$60 sps:$4 sm:$0xff]  }
  0xff   : > { %2676 = vmatprep.subr.bf16.mxu1 %v4118_v7  ;;  %v4199_v6 = vld [vmem:[%s4867_s29 + $0x6ac] ss:$60 sps:$4 sm:$0xff]   ;;  %v4202_v7 = vld [vmem:[%s4867_s29 + $0x204] ss:$60 sps:$4 sm:$0xff]  }
 0x101   : > { %3764 = vmatmul.mubr.msk.bf16.vlgmr.msra.gmra.mrb[4].mxu1 %vm2380_vm1, %v4917_v38  ;;  %2619 = vmatpush1.bf16.msra.mxu0 %v4113_v8  ;;  %v4197_v8 = vld [vmem:[%s4867_s29 + $0x6a8] ss:$60 sps:$4 sm:$0xff]  }
 0x102   : > { %2677 = vmatpush1.bf16.msra.mxu1 %v4116_v9  ;;  %2620 = vmatprep.subr.bf16.mxu0 %v4121_v10  ;;  %v4200_v9 = vld [vmem:[%s4867_s29 + $0x200] ss:$60 sps:$4 sm:$0xff]  }
 0x103   : > { %2678 = vmatprep.subr.bf16.mxu1 %v4124_v11  ;;  %2708 = vmatprep.mubr.bf16.mxu1 %v4908_v34  ;;  %v4205_v10 = vld [vmem:[%s4867_s29 + $0x724] ss:$60 sps:$4 sm:$0xff]   ;;  %v4208_v11 = vld [vmem:[%s4867_s29 + $0x27c] ss:$60 sps:$4 sm:$0xff]  }
 0x105   : > { %2621 = vmatpush1.bf16.msra.mxu0 %v4119_v12  ;;  %v4203_v12 = vld [vmem:[%s4867_s29 + $0x720] ss:$60 sps:$4 sm:$0xff]  }
 0x106   : > { %2679 = vmatpush1.bf16.msra.mxu1 %v4122_v13  ;;  %2622 = vmatprep.subr.bf16.mxu0 %v4127_v14  ;;  %v4206_v13 = vld [vmem:[%s4867_s29 + $0x278] ss:$60 sps:$4 sm:$0xff]  }
 0x107   : > { %2680 = vmatprep.subr.bf16.mxu1 %v4130_v16  ;;  %v4211_v14 = vld [vmem:[%s4867_s29 + $0x79c] ss:$60 sps:$4 sm:$0xff]   ;;  %v4214_v16 = vld [vmem:[%s4867_s29 + $0x2f4] ss:$60 sps:$4 sm:$0xff]  }
 0x109   : > { %2623 = vmatpush1.bf16.msra.mxu0 %v4125_v17  ;;  %v4209_v17 = vld [vmem:[%s4867_s29 + $0x798] ss:$60 sps:$4 sm:$0xff]  }
 0x10a   : > { %2681 = vmatpush1.bf16.msra.mxu1 %v4128_v18  ;;  %2624 = vmatprep.subr.bf16.mxu0 %v4133_v19  ;;  %v4212_v18 = vld [vmem:[%s4867_s29 + $0x2f0] ss:$60 sps:$4 sm:$0xff]  }
 0x10b   : > { %2682 = vmatprep.subr.bf16.mxu1 %v4136_v21  ;;  %v4217_v19 = vld [vmem:[%s4867_s29 + $0x814] ss:$60 sps:$4 sm:$0xff]   ;;  %v4220_v21 = vld [vmem:[%s4867_s29 + $0x36c] ss:$60 sps:$4 sm:$0xff]  }
 0x10d   : > { %2625 = vmatpush1.bf16.msra.mxu0 %v4131_v22  ;;  %v4215_v22 = vld [vmem:[%s4867_s29 + $0x810] ss:$60 sps:$4 sm:$0xff]  }
 0x10e   : > { %2683 = vmatpush1.bf16.msra.mxu1 %v4134_v23  ;;  %2635 = vmatprep.subr.bf16.mxu0 %v4139_v24  ;;  %v4218_v23 = vld [vmem:[%s4867_s29 + $0x368] ss:$60 sps:$4 sm:$0xff]  }
 0x10f   : > { %2684 = vmatprep.subr.bf16.mxu1 %v4142_v25  ;;  %v4223_v24 = vld [vmem:[%s4867_s29 + $0x88c] ss:$60 sps:$4 sm:$0xff]   ;;  %v4226_v25 = vld [vmem:[%s4867_s29 + $0x3e4] ss:$60 sps:$4 sm:$0xff]  }
 0x110   : > { %2627 = vmatmul.mubr.bf16.vlgmr.msra.gmra.mrb[4].mxu0 %v4904_v32 }
 0x111   : > { %2636 = vmatpush1.bf16.msra.mxu0 %v4137_v26  ;;  %2667 = vmatprep.mubr.bf16.mxu0 %v4650_v0  ;;  %v4221_v26 = vld [vmem:[%s4867_s29 + $0x888] ss:$60 sps:$4 sm:$0xff]  }
 0x112   : > { %2685 = vmatpush1.bf16.msra.mxu1 %v4140_v28  ;;  %2637 = vmatprep.subr.bf16.mxu0 %v4145_v29  ;;  %v4224_v28 = vld [vmem:[%s4867_s29 + $0x3e0] ss:$60 sps:$4 sm:$0xff]  }
 0x113   : > { %2686 = vmatprep.subr.bf16.mxu1 %v4148_v30  ;;  %v4229_v29 = vld [vmem:[%s4867_s29 + $0x904] ss:$60 sps:$4 sm:$0xff]   ;;  %v4232_v30 = vld [vmem:[%s4867_s29 + $0x45c] ss:$60 sps:$4 sm:$0xff]  }
 0x115   : > { %2638 = vmatpush1.bf16.msra.mxu0 %v4143_v31  ;;  %v4227_v31 = vld [vmem:[%s4867_s29 + $0x900] ss:$60 sps:$4 sm:$0xff]  }
 0x116   : > { %2687 = vmatpush1.bf16.msra.mxu1 %v4146_v33  ;;  %2639 = vmatprep.subr.bf16.mxu0 %v4151_v35  ;;  %v4230_v33 = vld [vmem:[%s4867_s29 + $0x458] ss:$60 sps:$4 sm:$0xff]  }
 0x117   : > { %2688 = vmatprep.subr.bf16.mxu1 %v4154_v36  ;;  %v4235_v35 = vld [vmem:[%s4867_s29 + $0x97c] ss:$60 sps:$4 sm:$0xff]   ;;  %v4238_v36 = vld [vmem:[%s4867_s29 + $0x4d4] ss:$60 sps:$4 sm:$0xff]  }
 0x119   : > { %2640 = vmatpush1.bf16.msra.mxu0 %v4149_v37  ;;  %v4233_v37 = vld [vmem:[%s4867_s29 + $0x978] ss:$60 sps:$4 sm:$0xff]  }
 0x11a   : > { %2689 = vmatpush1.bf16.msra.mxu1 %v4152_v39  ;;  %2641 = vmatprep.subr.bf16.mxu0 %v4157_v40  ;;  %v4236_v39 = vld [vmem:[%s4867_s29 + $0x4d0] ss:$60 sps:$4 sm:$0xff]  }
 0x11b   : > { %2690 = vmatprep.subr.bf16.mxu1 %v4160_v41  ;;  %v4244_v40 = vld [vmem:[%s4867_s29 + $0x9f0] ss:$60 sps:$4 sm:$0x3f]  }
 0x11c   : > { %v4239_v41 = vld [vmem:[%s4867_s29 + $0x9f4] ss:$60 sps:$4 sm:$0x3f]  }
 0x11d   : > { %2642 = vmatpush1.bf16.msra.mxu0 %v4155_v42  ;;  %v4243_v42 = vld [vmem:[%s4867_s29 + $0x54c] ss:$60 sps:$4 sm:$0xff]  }
 0x11e   : > { %2691 = vmatpush1.bf16.msra.mxu1 %v4158_v43  ;;  %2643 = vmatprep.subr.bf16.mxu0 %v4163_v44  ;;  %v4241_v43 = vld [vmem:[%s4867_s29 + $0x548] ss:$60 sps:$4 sm:$0xff]   ;;  %v2404_v44 = vsel %vm2384_vm0, %v4244_v40, 0 }
 0x11f   : > { %2692 = vmatprep.subr.bf16.mxu1 %v4166_v45  ;;  %v4247_v45 = vld [vmem:[%s4867_s29 + $0x5c4] ss:$60 sps:$4 sm:$0xff]  }
 0x120   : > { %v4314_v40 = vld [vmem:[%s4867_s29 + $0xa8] ss:$60 sps:$4 sm:$0xff]  }
 0x121   : > { %2644 = vmatpush1.bf16.msra.mxu0 %v4161_v46  ;;  %v4250_v46 = vld [vmem:[%s4867_s29 + $0x2c] ss:$60 sps:$4 sm:$0xff]  }
 0x122   : > { %2693 = vmatpush1.bf16.msra.mxu1 %v4164_v47  ;;  %3765 = vmatprep.subr.msk.bf16.mxu0 %vm2384_vm0, %v4167_v48  ;;  %v4245_v47 = vld [vmem:[%s4867_s29 + $0x5c0] ss:$60 sps:$4 sm:$0xff]   ;;  %v4248_v48 = vld [vmem:[%s4867_s29 + $0x28] ss:$60 sps:$4 sm:$0xff]  }
 0x123   : > { %2694 = vmatprep.subr.bf16.mxu1 %v4171_v49  ;;  %v4253_v49 = vld [vmem:[%s4867_s29 + $0x63c] ss:$60 sps:$4 sm:$0xff]  }
 0x125   : > { %2646 = vmatpush1.bf16.msra.mxu0 %v2398_v52  ;;  %v4254_v52 = vld [vmem:[%s4867_s29 + $0xa0] ss:$60 sps:$4 sm:$0xff]  }
 0x126   : > { %2695 = vmatpush1.bf16.msra.mxu1 %v4169_v51  ;;  %2758 = vmatprep.subr.bf16.mxu0 %v4178_v54  ;;  %v4251_v51 = vld [vmem:[%s4867_s29 + $0x638] ss:$60 sps:$4 sm:$0xff]  }
 0x127   : > { %2696 = vmatprep.subr.bf16.mxu1 %v4175_v53  ;;  %v4259_v53 = vld [vmem:[%s4867_s29 + $0x6b4] ss:$60 sps:$4 sm:$0xff]   ;;  %v4262_v54 = vld [vmem:[%s4867_s29 + $0x11c] ss:$60 sps:$4 sm:$0xff]  }
 0x128   : > { %3766 = vmatmul.mubr.msk.bf16.vlgmr.msra.gmra.mrb[4].mxu0 %vm2380_vm1, %v4917_v38 }
 0x129   : > { %2759 = vmatpush1.bf16.msra.mxu0 %v4176_v56  ;;  %2790 = vmatprep.mubr.bf16.mxu0 %v4908_v34  ;;  %v4260_v56 = vld [vmem:[%s4867_s29 + $0x118] ss:$60 sps:$4 sm:$0xff]  }
 0x12a   : > { %2697 = vmatpush1.bf16.msra.mxu1 %v4173_v55  ;;  %2760 = vmatprep.subr.bf16.mxu0 %v4184_v58  ;;  %v4257_v55 = vld [vmem:[%s4867_s29 + $0x6b0] ss:$60 sps:$4 sm:$0xff]  }
 0x12b   : > { %2698 = vmatprep.subr.bf16.mxu1 %v4181_v57  ;;  %v4265_v57 = vld [vmem:[%s4867_s29 + $0x72c] ss:$60 sps:$4 sm:$0xff]   ;;  %v4268_v58 = vld [vmem:[%s4867_s29 + $0x194] ss:$60 sps:$4 sm:$0xff]  }
 0x12d   : > { %2761 = vmatpush1.bf16.msra.mxu0 %v4182_v60  ;;  %v4266_v60 = vld [vmem:[%s4867_s29 + $0x190] ss:$60 sps:$4 sm:$0xff]  }
 0x12e   : > { %2699 = vmatpush1.bf16.msra.mxu1 %v4179_v59  ;;  %2762 = vmatprep.subr.bf16.mxu0 %v4190_v62  ;;  %v4263_v59 = vld [vmem:[%s4867_s29 + $0x728] ss:$60 sps:$4 sm:$0xff]  }
 0x12f   : > { %2700 = vmatprep.subr.bf16.mxu1 %v4187_v61  ;;  %v4271_v61 = vld [vmem:[%s4867_s29 + $0x7a4] ss:$60 sps:$4 sm:$0xff]   ;;  %v4274_v62 = vld [vmem:[%s4867_s29 + $0x20c] ss:$60 sps:$4 sm:$0xff]  }
 0x131   : > { %2763 = vmatpush1.bf16.msra.mxu0 %v4188_v1  ;;  %v4272_v1 = vld [vmem:[%s4867_s29 + $0x208] ss:$60 sps:$4 sm:$0xff]  }
 0x132   : > { %2701 = vmatpush1.bf16.msra.mxu1 %v4185_v63  ;;  %2764 = vmatprep.subr.bf16.mxu0 %v4196_v3  ;;  %v4269_v63 = vld [vmem:[%s4867_s29 + $0x7a0] ss:$60 sps:$4 sm:$0xff]  }
 0x133   : > { %2702 = vmatprep.subr.bf16.mxu1 %v4193_v2  ;;  %v4277_v2 = vld [vmem:[%s4867_s29 + $0x81c] ss:$60 sps:$4 sm:$0xff]   ;;  %v4280_v3 = vld [vmem:[%s4867_s29 + $0x284] ss:$60 sps:$4 sm:$0xff]  }
 0x135   : > { %2765 = vmatpush1.bf16.msra.mxu0 %v4194_v5  ;;  %v4278_v5 = vld [vmem:[%s4867_s29 + $0x280] ss:$60 sps:$4 sm:$0xff]  }
 0x136   : > { %2703 = vmatpush1.bf16.msra.mxu1 %v4191_v4  ;;  %2766 = vmatprep.subr.bf16.mxu0 %v4202_v7  ;;  %v4275_v4 = vld [vmem:[%s4867_s29 + $0x818] ss:$60 sps:$4 sm:$0xff]  }
 0x137   : > { %2704 = vmatprep.subr.bf16.mxu1 %v4199_v6  ;;  %v4283_v6 = vld [vmem:[%s4867_s29 + $0x894] ss:$60 sps:$4 sm:$0xff]   ;;  %v4286_v7 = vld [vmem:[%s4867_s29 + $0x2fc] ss:$60 sps:$4 sm:$0xff]  }
 0x139   : > { %2767 = vmatpush1.bf16.msra.mxu0 %v4200_v9  ;;  %v4284_v9 = vld [vmem:[%s4867_s29 + $0x2f8] ss:$60 sps:$4 sm:$0xff]  }
 0x13a   : > { %2705 = vmatpush1.bf16.msra.mxu1 %v4197_v8  ;;  %2768 = vmatprep.subr.bf16.mxu0 %v4208_v11  ;;  %v4281_v8 = vld [vmem:[%s4867_s29 + $0x890] ss:$60 sps:$4 sm:$0xff]  }
 0x13b   : > { %2706 = vmatprep.subr.bf16.mxu1 %v4205_v10  ;;  %v4289_v10 = vld [vmem:[%s4867_s29 + $0x90c] ss:$60 sps:$4 sm:$0xff]   ;;  %v4292_v11 = vld [vmem:[%s4867_s29 + $0x374] ss:$60 sps:$4 sm:$0xff]  }
 0x13d   : > { %2769 = vmatpush1.bf16.msra.mxu0 %v4206_v13  ;;  %v4290_v13 = vld [vmem:[%s4867_s29 + $0x370] ss:$60 sps:$4 sm:$0xff]  }
 0x13e   : > { %2707 = vmatpush1.bf16.msra.mxu1 %v4203_v12  ;;  %2770 = vmatprep.subr.bf16.mxu0 %v4214_v16  ;;  %v4287_v12 = vld [vmem:[%s4867_s29 + $0x908] ss:$60 sps:$4 sm:$0xff]  }
 0x13f   : > { %2717 = vmatprep.subr.bf16.mxu1 %v4211_v14  ;;  %v4295_v14 = vld [vmem:[%s4867_s29 + $0x984] ss:$60 sps:$4 sm:$0xff]   ;;  %v4298_v16 = vld [vmem:[%s4867_s29 + $0x3ec] ss:$60 sps:$4 sm:$0xff]  }
 0x141   : > { %2709 = vmatmul.mubr.bf16.vlgmr.msra.gmra.mrb[8].mxu1 %v4904_v32  ;;  %2771 = vmatpush1.bf16.msra.mxu0 %v4212_v18  ;;  %v4296_v18 = vld [vmem:[%s4867_s29 + $0x3e8] ss:$60 sps:$4 sm:$0xff]  }
 0x142   : > { %2718 = vmatpush1.bf16.msra.mxu1 %v4209_v17  ;;  %2772 = vmatprep.subr.bf16.mxu0 %v4220_v21  ;;  %v4293_v17 = vld [vmem:[%s4867_s29 + $0x980] ss:$60 sps:$4 sm:$0xff]  }
 0x143   : > { %2719 = vmatprep.subr.bf16.mxu1 %v4217_v19  ;;  %2749 = vmatprep.mubr.bf16.mxu1 %v4650_v0  ;;  %v4299_v19 = vld [vmem:[%s4867_s29 + $0x9fc] ss:$60 sps:$4 sm:$0x3f]   ;;  %v4303_v21 = vld [vmem:[%s4867_s29 + $0x464] ss:$60 sps:$4 sm:$0xff]  }
 0x145   : > { %2773 = vmatpush1.bf16.msra.mxu0 %v4218_v23  ;;  %v4301_v23 = vld [vmem:[%s4867_s29 + $0x460] ss:$60 sps:$4 sm:$0xff]  }
 0x146   : > { %2720 = vmatpush1.bf16.msra.mxu1 %v4215_v22  ;;  %2774 = vmatprep.subr.bf16.mxu0 %v4226_v25  ;;  %v4304_v22 = vld [vmem:[%s4867_s29 + $0x9f8] ss:$60 sps:$4 sm:$0x3f]  }
 0x147   : > { %2721 = vmatprep.subr.bf16.mxu1 %v4223_v24  ;;  %v2410_v24 = vsel %vm2384_vm0, %v4304_v22, 0  ;;  %v4307_v25 = vld [vmem:[%s4867_s29 + $0x4dc] ss:$60 sps:$4 sm:$0xff]   ;;  %v4365_v22 = vld [vmem:[%s4867_s29 + $0x988] ss:$60 sps:$4 sm:$0xff]  }
 0x149   : > { %2775 = vmatpush1.bf16.msra.mxu0 %v4224_v28 }
 0x14a   : > { %2722 = vmatpush1.bf16.msra.mxu1 %v4221_v26  ;;  %2776 = vmatprep.subr.bf16.mxu0 %v4232_v30  ;;  %v4310_v26 = vld [vmem:[%s4867_s29 + $0x34] ss:$60 sps:$4 sm:$0xff]  }
 0x14b   : > { %2723 = vmatprep.subr.bf16.mxu1 %v4229_v29 }
 0x14d   : > { %2777 = vmatpush1.bf16.msra.mxu0 %v4230_v33  ;;  %v4308_v33 = vld [vmem:[%s4867_s29 + $0x30] ss:$60 sps:$4 sm:$0xff]  }
 0x14e   : > { %2724 = vmatpush1.bf16.msra.mxu1 %v4227_v31  ;;  %2778 = vmatprep.subr.bf16.mxu0 %v4238_v36  ;;  %v4305_v31 = vld [vmem:[%s4867_s29 + $0x4d8] ss:$60 sps:$4 sm:$0xff]  }
 0x14f   : > { %2725 = vmatprep.subr.bf16.mxu1 %v4235_v35  ;;  %v4313_v36 = vld [vmem:[%s4867_s29 + $0x554] ss:$60 sps:$4 sm:$0xff]  }
 0x151   : > { %2779 = vmatpush1.bf16.msra.mxu0 %v4236_v39  ;;  %v4311_v39 = vld [vmem:[%s4867_s29 + $0x550] ss:$60 sps:$4 sm:$0xff]  }
 0x152   : > { %2726 = vmatpush1.bf16.msra.mxu1 %v4233_v37  ;;  %2780 = vmatprep.subr.bf16.mxu0 %v4243_v42  ;;  %v4316_v37 = vld [vmem:[%s4867_s29 + $0xac] ss:$60 sps:$4 sm:$0xff]   ;;  %v4322_v42 = vld [vmem:[%s4867_s29 + $0x124] ss:$60 sps:$4 sm:$0xff]  }
 0x153   : > { %3767 = vmatprep.subr.msk.bf16.mxu1 %vm2384_vm0, %v4239_v41  ;;  %v4319_v41 = vld [vmem:[%s4867_s29 + $0x5cc] ss:$60 sps:$4 sm:$0xff]  }
 0x155   : > { %2781 = vmatpush1.bf16.msra.mxu0 %v4241_v43  ;;  %v4317_v43 = vld [vmem:[%s4867_s29 + $0x5c8] ss:$60 sps:$4 sm:$0xff]  }
 0x156   : > { %2728 = vmatpush1.bf16.msra.mxu1 %v2404_v44  ;;  %2782 = vmatprep.subr.bf16.mxu0 %v4247_v45  ;;  %v4320_v44 = vld [vmem:[%s4867_s29 + $0x120] ss:$60 sps:$4 sm:$0xff]  }
 0x157   : > { %2840 = vmatprep.subr.bf16.mxu1 %v4250_v46  ;;  %v4325_v45 = vld [vmem:[%s4867_s29 + $0x644] ss:$60 sps:$4 sm:$0xff]   ;;  %v4328_v46 = vld [vmem:[%s4867_s29 + $0x19c] ss:$60 sps:$4 sm:$0xff]  }
 0x159   : > { %3768 = vmatmul.mubr.msk.bf16.vlgmr.msra.gmra.mrb[8].mxu1 %vm2380_vm1, %v4917_v38  ;;  %2783 = vmatpush1.bf16.msra.mxu0 %v4245_v47  ;;  %v4323_v47 = vld [vmem:[%s4867_s29 + $0x640] ss:$60 sps:$4 sm:$0xff]  }
 0x15a   : > { %2841 = vmatpush1.bf16.msra.mxu1 %v4248_v48  ;;  %2784 = vmatprep.subr.bf16.mxu0 %v4253_v49  ;;  %v4326_v48 = vld [vmem:[%s4867_s29 + $0x198] ss:$60 sps:$4 sm:$0xff]  }
 0x15b   : > { %2842 = vmatprep.subr.bf16.mxu1 %v4256_v50  ;;  %2872 = vmatprep.mubr.bf16.mxu1 %v4908_v34  ;;  %v4331_v49 = vld [vmem:[%s4867_s29 + $0x6bc] ss:$60 sps:$4 sm:$0xff]   ;;  %v4334_v50 = vld [vmem:[%s4867_s29 + $0x214] ss:$60 sps:$4 sm:$0xff]  }
 0x15d   : > { %2785 = vmatpush1.bf16.msra.mxu0 %v4251_v51  ;;  %v4329_v51 = vld [vmem:[%s4867_s29 + $0x6b8] ss:$60 sps:$4 sm:$0xff]  }
 0x15e   : > { %2843 = vmatpush1.bf16.msra.mxu1 %v4254_v52  ;;  %2786 = vmatprep.subr.bf16.mxu0 %v4259_v53  ;;  %v4332_v52 = vld [vmem:[%s4867_s29 + $0x210] ss:$60 sps:$4 sm:$0xff]  }
 0x15f   : > { %2844 = vmatprep.subr.bf16.mxu1 %v4262_v54  ;;  %v4337_v53 = vld [vmem:[%s4867_s29 + $0x734] ss:$60 sps:$4 sm:$0xff]   ;;  %v4340_v54 = vld [vmem:[%s4867_s29 + $0x28c] ss:$60 sps:$4 sm:$0xff]  }
 0x161   : > { %2787 = vmatpush1.bf16.msra.mxu0 %v4257_v55  ;;  %v4335_v55 = vld [vmem:[%s4867_s29 + $0x730] ss:$60 sps:$4 sm:$0xff]  }
 0x162   : > { %2845 = vmatpush1.bf16.msra.mxu1 %v4260_v56  ;;  %2788 = vmatprep.subr.bf16.mxu0 %v4265_v57  ;;  %v4338_v56 = vld [vmem:[%s4867_s29 + $0x288] ss:$60 sps:$4 sm:$0xff]  }
 0x163   : > { %2846 = vmatprep.subr.bf16.mxu1 %v4268_v58  ;;  %v4343_v57 = vld [vmem:[%s4867_s29 + $0x7ac] ss:$60 sps:$4 sm:$0xff]   ;;  %v4346_v58 = vld [vmem:[%s4867_s29 + $0x304] ss:$60 sps:$4 sm:$0xff]  }
 0x165   : > { %2789 = vmatpush1.bf16.msra.mxu0 %v4263_v59  ;;  %v4341_v59 = vld [vmem:[%s4867_s29 + $0x7a8] ss:$60 sps:$4 sm:$0xff]  }
 0x166   : > { %2847 = vmatpush1.bf16.msra.mxu1 %v4266_v60  ;;  %2799 = vmatprep.subr.bf16.mxu0 %v4271_v61  ;;  %v4344_v60 = vld [vmem:[%s4867_s29 + $0x300] ss:$60 sps:$4 sm:$0xff]  }
 0x167   : > { %2848 = vmatprep.subr.bf16.mxu1 %v4274_v62  ;;  %v4349_v61 = vld [vmem:[%s4867_s29 + $0x824] ss:$60 sps:$4 sm:$0xff]   ;;  %v4352_v62 = vld [vmem:[%s4867_s29 + $0x37c] ss:$60 sps:$4 sm:$0xff]  }
 0x168   : > { %2791 = vmatmul.mubr.bf16.vlgmr.msra.gmra.mrb[8].mxu0 %v4904_v32 }
 0x169   : > { %2800 = vmatpush1.bf16.msra.mxu0 %v4269_v63  ;;  %2831 = vmatprep.mubr.bf16.mxu0 %v4650_v0  ;;  %v4347_v63 = vld [vmem:[%s4867_s29 + $0x820] ss:$60 sps:$4 sm:$0xff]  }
 0x16a   : > { %2849 = vmatpush1.bf16.msra.mxu1 %v4272_v1  ;;  %2801 = vmatprep.subr.bf16.mxu0 %v4277_v2  ;;  %v4350_v1 = vld [vmem:[%s4867_s29 + $0x378] ss:$60 sps:$4 sm:$0xff]  }
 0x16b   : > { %2850 = vmatprep.subr.bf16.mxu1 %v4280_v3  ;;  %v4355_v2 = vld [vmem:[%s4867_s29 + $0x89c] ss:$60 sps:$4 sm:$0xff]   ;;  %v4358_v3 = vld [vmem:[%s4867_s29 + $0x3f4] ss:$60 sps:$4 sm:$0xff]  }
 0x16d   : > { %2802 = vmatpush1.bf16.msra.mxu0 %v4275_v4  ;;  %v2307_v4 = vsub.s32 0, %v4890_v20 }
 0x16e   : > { %2851 = vmatpush1.bf16.msra.mxu1 %v4278_v5  ;;  %2803 = vmatprep.subr.bf16.mxu0 %v4283_v6  ;;  %v4353_v5 = vld [vmem:[%s4867_s29 + $0x898] ss:$60 sps:$4 sm:$0xff]   ;;  %v4356_v6 = vld [vmem:[%s4867_s29 + $0x3f0] ss:$60 sps:$4 sm:$0xff]  }
 0x16f   : > { %2852 = vmatprep.subr.bf16.mxu1 %v4286_v7  ;;  %v5215_v7 = vld [vmem:[%s5212_s26] sm:$0xff] }
 0x171   : > { %2804 = vmatpush1.bf16.msra.mxu0 %v4281_v8  ;;  %v2311_v8 = vsub.s32 1, %v4890_v20 }
 0x172   : > { %2853 = vmatpush1.bf16.msra.mxu1 %v4284_v9  ;;  %2805 = vmatprep.subr.bf16.mxu0 %v4289_v10  ;;  %v4361_v9 = vld [vmem:[%s4867_s29 + $0x914] ss:$60 sps:$4 sm:$0xff]   ;;  %v4364_v10 = vld [vmem:[%s4867_s29 + $0x46c] ss:$60 sps:$4 sm:$0xff]  }
 0x173   : > { %2854 = vmatprep.subr.bf16.mxu1 %v4292_v11  ;;  %v2308_v11 = vrot.slane %v5215_v7, %v2307_v4 }
 0x175   : > { %2806 = vmatpush1.bf16.msra.mxu0 %v4287_v12  ;;  %v2312_v12 = vrot.slane %v5215_v7, %v2311_v8 }
 0x176   : > { %2855 = vmatpush1.bf16.msra.mxu1 %v4290_v13  ;;  %2807 = vmatprep.subr.bf16.mxu0 %v4295_v14  ;;  %v4359_v13 = vld [vmem:[%s4867_s29 + $0x910] ss:$60 sps:$4 sm:$0xff]   ;;  %v4362_v14 = vld [vmem:[%s4867_s29 + $0x468] ss:$60 sps:$4 sm:$0xff]  }
 0x177   : > { %2856 = vmatprep.subr.bf16.mxu1 %v4298_v16  ;;  %v4367_v16 = vld [vmem:[%s4867_s29 + $0x98c] ss:$60 sps:$4 sm:$0xff]  }
 0x179   : > { %2808 = vmatpush1.bf16.msra.mxu0 %v4293_v17  ;;  %v4370_v17 = vld [vmem:[%s4867_s29 + $0x4e4] ss:$60 sps:$4 sm:$0xff]  }
 0x17a   : > { %2857 = vmatpush1.bf16.msra.mxu1 %v4296_v18  ;;  %3769 = vmatprep.subr.msk.bf16.mxu0 %vm2384_vm0, %v4299_v19 }
 0x17b   : > { %2858 = vmatprep.subr.bf16.mxu1 %v4303_v21 }
 0x17c   : > { %v5165_v28 = vpop.f32.mrb[0].mxu1 }
 0x17d   : > { %v5167_v29 = vpop.f32.mrb[1].mxu1  ;;  %2810 = vmatpush1.bf16.msra.mxu0 %v2410_v24  ;;  %v4368_v24 = vld [vmem:[%s4867_s29 + $0x4e0] ss:$60 sps:$4 sm:$0xff]  }
 0x17e   : > { %v2509_v30 = vpop.f32.mrb[2].mxu1  ;;  %2859 = vmatpush1.bf16.msra.mxu1 %v4301_v23  ;;  %2922 = vmatprep.subr.bf16.mxu0 %v4310_v26 }
 0x17f   : > { %v2510_v35 = vpop.f32.mrb[3].mxu1  ;;  %2860 = vmatprep.subr.bf16.mxu1 %v4307_v25  ;;  %v4371_v25 = vld [vmem:[%s4867_s29 + $0xa04] ss:$60 sps:$4 sm:$0x3f]  }
 0x180   : > { %3770 = vmatmul.mubr.msk.bf16.vlgmr.msra.gmra.mrb[8].mxu0 %vm2380_vm1, %v4917_v38 }
 0x181   : > { %2923 = vmatpush1.bf16.msra.mxu0 %v4308_v33  ;;  %2954 = vmatprep.mubr.bf16.mxu0 %v4908_v34  ;;  %v4376_v33 = vld [vmem:[%s4867_s29 + $0xa00] ss:$60 sps:$4 sm:$0x3f]  }
 0x182   : > { %2861 = vmatpush1.bf16.msra.mxu1 %v4305_v31  ;;  %2924 = vmatprep.subr.bf16.mxu0 %v4316_v37  ;;  %v4375_v31 = vld [vmem:[%s4867_s29 + $0x55c] ss:$60 sps:$4 sm:$0xff]  }
 0x183   : > { %2862 = vmatprep.subr.bf16.mxu1 %v4313_v36 }
 0x185   : > { %2925 = vmatpush1.bf16.msra.mxu0 %v4314_v40  ;;  %v4373_v40 = vld [vmem:[%s4867_s29 + $0x558] ss:$60 sps:$4 sm:$0xff]  }
 0x186   : > { %2863 = vmatpush1.bf16.msra.mxu1 %v4311_v39  ;;  %2926 = vmatprep.subr.bf16.mxu0 %v4322_v42  ;;  %v4380_v42 = vld [vmem:[%s4867_s29 + $0x3f8] ss:$60 sps:$4 sm:$0xff]  }
 0x187   : > { %2864 = vmatprep.subr.bf16.mxu1 %v4319_v41  ;;  %v4379_v41 = vld [vmem:[%s4867_s29 + $0x5d4] ss:$60 sps:$4 sm:$0xff]  }
 0x189   : > { %2927 = vmatpush1.bf16.msra.mxu0 %v4320_v44  ;;  %v4384_v44 = vld [vmem:[%s4867_s29 + $0x64c] ss:$60 sps:$4 sm:$0xff]  }
 0x18a   : > { %2865 = vmatpush1.bf16.msra.mxu1 %v4317_v43  ;;  %2928 = vmatprep.subr.bf16.mxu0 %v4328_v46  ;;  %v4381_v43 = vld [vmem:[%s4867_s29 + $0x38] ss:$60 sps:$4 sm:$0xff]   ;;  %v4382_v46 = vld [vmem:[%s4867_s29 + $0x648] ss:$60 sps:$4 sm:$0xff]  }
 0x18b   : > { %2866 = vmatprep.subr.bf16.mxu1 %v4325_v45  ;;  %v4385_v45 = vld [vmem:[%s4867_s29 + $0x470] ss:$60 sps:$4 sm:$0xff]  }
 0x18d   : > { %2929 = vmatpush1.bf16.msra.mxu0 %v4326_v48  ;;  %v4389_v48 = vld [vmem:[%s4867_s29 + $0x6c4] ss:$60 sps:$4 sm:$0xff]  }
 0x18e   : > { %2867 = vmatpush1.bf16.msra.mxu1 %v4323_v47  ;;  %2930 = vmatprep.subr.bf16.mxu0 %v4334_v50  ;;  %v4386_v47 = vld [vmem:[%s4867_s29 + $0xb0] ss:$60 sps:$4 sm:$0xff]  }
 0x18f   : > { %2868 = vmatprep.subr.bf16.mxu1 %v4331_v49  ;;  %v4390_v49 = vld [vmem:[%s4867_s29 + $0x4e8] ss:$60 sps:$4 sm:$0xff]  }
 0x191   : > { %2931 = vmatpush1.bf16.msra.mxu0 %v4332_v52 }
 0x192   : > { %2869 = vmatpush1.bf16.msra.mxu1 %v4329_v51  ;;  %2932 = vmatprep.subr.bf16.mxu0 %v4340_v54  ;;  %v4391_v54 = vld [vmem:[%s4867_s29 + $0x128] ss:$60 sps:$4 sm:$0xff]  }
 0x193   : > { %2870 = vmatprep.subr.bf16.mxu1 %v4337_v53  ;;  %v4387_v53 = vld [vmem:[%s4867_s29 + $0x6c0] ss:$60 sps:$4 sm:$0xff]  }
 0x195   : > { %2933 = vmatpush1.bf16.msra.mxu0 %v4338_v56  ;;  %v4394_v56 = vld [vmem:[%s4867_s29 + $0x73c] ss:$60 sps:$4 sm:$0xff]  }
 0x196   : > { %2871 = vmatpush1.bf16.msra.mxu1 %v4335_v55  ;;  %2934 = vmatprep.subr.bf16.mxu0 %v4346_v58  ;;  %v4396_v58 = vld [vmem:[%s4867_s29 + $0x1a0] ss:$60 sps:$4 sm:$0xff]  }
 0x197   : > { %2881 = vmatprep.subr.bf16.mxu1 %v4343_v57  ;;  %v4395_v57 = vld [vmem:[%s4867_s29 + $0x560] ss:$60 sps:$4 sm:$0xff]  }
 0x199   : > { %2873 = vmatmul.mubr.bf16.vlgmr.msra.gmra.mrb[12].mxu1 %v4904_v32  ;;  %2935 = vmatpush1.bf16.msra.mxu0 %v4344_v60  ;;  %v4400_v60 = vld [vmem:[%s4867_s29 + $0x5d8] ss:$60 sps:$4 sm:$0xff]  }
 0x19a   : > { %2882 = vmatpush1.bf16.msra.mxu1 %v4341_v59  ;;  %2936 = vmatprep.subr.bf16.mxu0 %v4352_v62  ;;  %v4399_v59 = vld [vmem:[%s4867_s29 + $0x7b4] ss:$60 sps:$4 sm:$0xff]  }
 0x19b   : > { %2883 = vmatprep.subr.bf16.mxu1 %v4349_v61  ;;  %2913 = vmatprep.mubr.bf16.mxu1 %v4650_v0  ;;  %v4397_v61 = vld [vmem:[%s4867_s29 + $0x7b0] ss:$60 sps:$4 sm:$0xff]   ;;  %v4401_v62 = vld [vmem:[%s4867_s29 + $0x218] ss:$60 sps:$4 sm:$0xff]  }
 0x19d   : > { %2937 = vmatpush1.bf16.msra.mxu0 %v4350_v1  ;;  %v4405_v1 = vld [vmem:[%s4867_s29 + $0x650] ss:$60 sps:$4 sm:$0xff]  }
 0x19e   : > { %2884 = vmatpush1.bf16.msra.mxu1 %v4347_v63  ;;  %2938 = vmatprep.subr.bf16.mxu0 %v4358_v3  ;;  %v4404_v63 = vld [vmem:[%s4867_s29 + $0x82c] ss:$60 sps:$4 sm:$0xff]  }
 0x19f   : > { %2885 = vmatprep.subr.bf16.mxu1 %v4355_v2  ;;  %v4402_v3 = vld [vmem:[%s4867_s29 + $0x828] ss:$60 sps:$4 sm:$0xff]  }
 0x1a1   : > { %2939 = vmatpush1.bf16.msra.mxu0 %v4356_v6 }
 0x1a2   : > { %2886 = vmatpush1.bf16.msra.mxu1 %v4353_v5  ;;  %2940 = vmatprep.subr.bf16.mxu0 %v4364_v10  ;;  %v4406_v5 = vld [vmem:[%s4867_s29 + $0x290] ss:$60 sps:$4 sm:$0xff]   ;;  %v4410_v10 = vld [vmem:[%s4867_s29 + $0x6c8] ss:$60 sps:$4 sm:$0xff]  }
 0x1a3   : > { %2887 = vmatprep.subr.bf16.mxu1 %v4361_v9  ;;  %v2464_v18 = vpop.f32.mrb[0].mxu0  ;;  %v4409_v9 = vld [vmem:[%s4867_s29 + $0x8a4] ss:$60 sps:$4 sm:$0xff]  }
 0x1a4   : > { %v2465_v19 = vadd.f32 %v2464_v18, %v2308_v11  ;;  %v2466_v21 = vpop.f32.mrb[1].mxu0  ;;  %v4416_v18 = vld [vmem:[%s4867_s29 + $0x380] ss:$60 sps:$4 sm:$0xff]  }
 0x1a5   : > { %v2467_v23 = vadd.f32 %v2466_v21, %v2312_v12  ;;  %2941 = vmatpush1.bf16.msra.mxu0 %v4362_v14  ;;  %v2468_v26 = vpop.f32.mrb[2].mxu0  ;;  %v4407_v12 = vld [vmem:[%s4867_s29 + $0x8a0] ss:$60 sps:$4 sm:$0xff]   ;;  %v4417_v21 = vld [vmem:[%s4867_s29 + $0x990] ss:$60 sps:$4 sm:$0xff]  }
 0x1a6   : > { %2888 = vmatpush1.bf16.msra.mxu1 %v4359_v13  ;;  %v2506_v30 = vadd.f32 %v5165_v28, %v2465_v19  ;;  %2942 = vmatprep.subr.bf16.mxu0 %v4370_v17  ;;  %v2469_v35 = vpop.f32.mrb[3].mxu0  ;;  %v2416_v28 = vsel %vm2384_vm0, %v4376_v33, 0  ;;  %v4411_v13 = vld [vmem:[%s4867_s29 + $0x308] ss:$60 sps:$4 sm:$0xff]   ;;  %v4414_v14 = vld [vmem:[%s4867_s29 + $0x91c] ss:$60 sps:$4 sm:$0xff]  }
 0x1a7   : > { %2889 = vmatprep.subr.bf16.mxu1 %v4367_v16  ;;  %v2508_v36 = vadd.f32 %v5167_v29, %v2467_v23  ;;  %v4377_v29 = vld [vmem:[%s4867_s29 + $0x5d0] ss:$60 sps:$4 sm:$0xff]   ;;  %v4415_v16 = vld [vmem:[%s4867_s29 + $0x740] ss:$60 sps:$4 sm:$0xff]   ;;  %v4412_v17 = vld [vmem:[%s4867_s29 + $0x918] ss:$60 sps:$4 sm:$0xff]  }
 0x1a8   : > { %v3776_v37 = vmul.f32 -1.442695, %v2506_v30  ;;  %v4419_v19 = vld [vmem:[%s4867_s29 + $0x994] ss:$60 sps:$4 sm:$0xff]   ;;  %v2319_v23 = vsub.s32 3, %v4890_v20 }
 0x1a9   : > { %v3777_v39 = vmul.f32 -1.442695, %v2508_v36  ;;  %2943 = vmatpush1.bf16.msra.mxu0 %v4368_v24  ;;  %v4652_v24 = vmov 0.0   ;;  %v4423_v26 = vld [vmem:[%s4867_s29 + $0xa08] ss:$60 sps:$4 sm:$0x3f]  }
 0x1aa   : > { %2890 = vmatpush1.bf16.msra.mxu1 %v4365_v22  ;;  %4429 = vpow2.f32 %v3776_v37  ;;  %2944 = vmatprep.subr.bf16.mxu0 %v4375_v31  ;;  %v4420_v22 = vld [vmem:[%s4867_s29 + $0x7b8] ss:$60 sps:$4 sm:$0xff]   ;;  %v2320_v31 = vrot.slane %v5215_v7, %v2319_v23  ;;  %v4424_v33 = vld [vmem:[%s4867_s29 + $0x830] ss:$60 sps:$4 sm:$0xff]   ;;  %v2422_v35 = vsel %vm2384_vm0, %v4423_v26, 0 }
 0x1ab   : > { %3771 = vmatprep.subr.msk.bf16.mxu1 %vm2384_vm0, %v4371_v25  ;;  %4431 = vpow2.f32 %v3777_v39  ;;  %v4421_v25 = vld [vmem:[%s4867_s29 + $0xa0c] ss:$60 sps:$4 sm:$0x3f]  }
 0x1ad   : > { %2945 = vmatpush1.bf16.msra.mxu0 %v4373_v40 }
 0x1ae   : > { %2892 = vmatpush1.bf16.msra.mxu1 %v2416_v28  ;;  %2946 = vmatprep.subr.bf16.mxu0 %v4379_v41  ;;  %v4425_v28 = vld [vmem:[%s4867_s29 + $0x8a8] ss:$60 sps:$4 sm:$0xff]  }
 0x1af   : > { %3799 = vmatprep.subr.bf16.mxu1 %v4380_v42 }
 0x1b1   : > { %3772 = vmatmul.mubr.msk.bf16.vlgmr.msra.gmra.mrb[12].mxu1 %vm2380_vm1, %v4917_v38  ;;  %2947 = vmatpush1.bf16.msra.mxu0 %v4377_v29 }
 0x1b2   : > { %3800 = vmatpush3.bf16.msra.mxu1 %v4381_v43  ;;  %2948 = vmatprep.subr.bf16.mxu0 %v4384_v44  ;;  %v4426_v43 = vld [vmem:[%s4867_s29 + $0x920] ss:$60 sps:$4 sm:$0xff]   ;;  %v4427_v44 = vld [vmem:[%s4867_s29 + $0x998] ss:$60 sps:$4 sm:$0xff]  }
 0x1b3   : > { %3801 = vmatprep.subr.bf16.mxu1 %v4385_v45  ;;  %3036 = vmatprep.mubr.bf16.mxu1 %v4908_v34  ;;  %v4392_v34 = vld [vmem:[%s4867_s29 + $0x738] ss:$60 sps:$4 sm:$0xff]   ;;  %v4428_v45 = vld [vmem:[%s4867_s29 + $0xa10] ss:$60 sps:$4 sm:$0x3f]  }
 0x1b4   : > { %v4430_v50 = vpop.eup %4429 }
 0x1b5   : > { %v4432_v51 = vpop.eup %4431  ;;  %v3129_v52 = vadd.f32 1.0, %v4430_v50  ;;  %2949 = vmatpush1.bf16.msra.mxu0 %v4382_v46 }
 0x1b6   : > { %3802 = vmatpush3.bf16.msra.mxu1 %v4386_v47  ;;  %v3130_v55 = vadd.f32 1.0, %v4432_v51  ;;  %2950 = vmatprep.subr.bf16.mxu0 %v4389_v48  ;;  %v2428_v47 = vsel %vm2384_vm0, %v4428_v45, 0 }
 0x1b7   : > { %3803 = vmatprep.subr.bf16.mxu1 %v4390_v49  ;;  %4433 = vrcp.f32 %v3129_v52 }
 0x1b8   : > { %4435 = vrcp.f32 %v3130_v55 }
 0x1b9   : > { %2951 = vmatpush1.bf16.msra.mxu0 %v4387_v53 }
 0x1ba   : > { %3804 = vmatpush3.bf16.msra.mxu1 %v4391_v54  ;;  %2952 = vmatprep.subr.bf16.mxu0 %v4394_v56  ;;  %v2323_v56 = vsub.s32 4, %v4890_v20 }
 0x1bb   : > { %3805 = vmatprep.subr.bf16.mxu1 %v4395_v57 }
 0x1bd   : > { %2953 = vmatpush1.bf16.msra.mxu0 %v4392_v34  ;;  %v2327_v34 = vsub.s32 5, %v4890_v20 }
 0x1be   : > { %3806 = vmatpush3.bf16.msra.mxu1 %v4396_v58  ;;  %2963 = vmatprep.subr.bf16.mxu0 %v4399_v59  ;;  %v2324_v58 = vrot.slane %v5215_v7, %v2323_v56 }
 0x1bf   : > { %3807 = vmatprep.subr.bf16.mxu1 %v4400_v60 }
 0x1c0   : > { %2955 = vmatmul.mubr.bf16.vlgmr.msra.gmra.mrb[12].mxu0 %v4904_v32 }
 0x1c1   : > { %v5266_v2 = vpop.eup %4433  ;;  %2964 = vmatpush1.bf16.msra.mxu0 %v4397_v61  ;;  %2995 = vmatprep.mubr.bf16.mxu0 %v4650_v0  ;;  %v2315_v0 = vsub.s32 2, %v4890_v20 }
 0x1c2   : > { %3808 = vmatpush3.bf16.msra.mxu1 %v4401_v62  ;;  %v5270_v6 = vpop.eup %4435  ;;  %2965 = vmatprep.subr.bf16.mxu0 %v4404_v63 }
 0x1c3   : > { %3809 = vmatprep.subr.bf16.mxu1 %v4405_v1  ;;  %v3189_v11 = vcombine.low %v5266_v2, %v5270_v6  ;;  %v2316_v30 = vrot.slane %v5215_v7, %v2315_v0 }
 0x1c5   : > { %2966 = vmatpush1.bf16.msra.mxu0 %v4402_v3  ;;  %v3199_v54 = vrot.slane %v3189_v11, %v4899_v27 }
 0x1c6   : > { %3810 = vmatpush3.bf16.msra.mxu1 %v4406_v5  ;;  %2967 = vmatprep.subr.bf16.mxu0 %v4409_v9 }
 0x1c7   : > { %3811 = vmatprep.subr.bf16.mxu1 %v4410_v10 }
 0x1c9   : > { %2968 = vmatpush1.bf16.msra.mxu0 %v4407_v12 }
 0x1ca   : > { %3812 = vmatpush3.bf16.msra.mxu1 %v4411_v13  ;;  %2969 = vmatprep.subr.bf16.mxu0 %v4414_v14  ;;  %v2331_v14 = vsub.s32 6, %v4890_v20 }
 0x1cb   : > { %3813 = vmatprep.subr.bf16.mxu1 %v4415_v16  ;;  %v2335_v16 = vsub.s32 7, %v4890_v20 }
 0x1cd   : > { %2970 = vmatpush1.bf16.msra.mxu0 %v4412_v17  ;;  %v2332_v17 = vrot.slane %v5215_v7, %v2331_v14 }
 0x1ce   : > { %3814 = vmatpush3.bf16.msra.mxu1 %v4416_v18  ;;  %2971 = vmatprep.subr.bf16.mxu0 %v4419_v19  ;;  %v2336_v18 = vrot.slane %v5215_v7, %v2335_v16 }
 0x1cf   : > { %3828 = vmatprep.subr.bf16.mxu1 %v4652_v24 }
 0x1d1   : > { %3037 = vmatmul.mubr.bf16.vlgmr.msra.gmra.mrb[16].mxu1 %v4904_v32  ;;  %2972 = vmatpush1.bf16.msra.mxu0 %v4417_v21 }
 0x1d2   : > { %3829 = vmatpush3.bf16.msra.mxu1 %v4420_v22  ;;  %3773 = vmatprep.subr.msk.bf16.mxu0 %vm2384_vm0, %v4421_v25 }
 0x1d3   : > { %3830 = vmatprep.subr.bf16.mxu1 %v4652_v24  ;;  %3840 = vmatprep.mubr.msk.bf16.mxu1 %vm4653_vm2, %v4652_v24 }
 0x1d4   : > { %v2587_v36 = vpop.f32.mrb[4].mxu1 }
 0x1d5   : > { %v3848_v32 = vadd.f32 %v2587_v36, %v2316_v30  ;;  %v2589_v37 = vpop.f32.mrb[5].mxu1  ;;  %2974 = vmatpush1.bf16.msra.mxu0 %v2422_v35 }
 0x1d6   : > { %v3849_v39 = vadd.f32 %v2589_v37, %v2320_v31  ;;  %v2591_v40 = vpop.f32.mrb[6].mxu1  ;;  %3831 = vmatpush3.bf16.msra.mxu1 %v4424_v33 }
 0x1d7   : > { %v3778_v41 = vmul.f32 -1.442695, %v3848_v32  ;;  %v2592_v42 = vpop.f32.mrb[7].mxu1  ;;  %3832 = vmatprep.subr.bf16.mxu1 %v4652_v24 }
 0x1d8   : > { %v3779_v29 = vmul.f32 -1.442695, %v3849_v39  ;;  %3774 = vmatmul.mubr.msk.bf16.vlgmr.msra.gmra.mrb[12].mxu0 %vm2380_vm1, %v4917_v38  ;;  %v5331_v42 = vld [vmem:[%s5212_s26 + $0x8] sm:$0xff] }
 0x1d9   : > { %4437 = vpow2.f32 %v3778_v41 }
 0x1da   : > { %4439 = vpow2.f32 %v3779_v29  ;;  %3833 = vmatpush3.bf16.msra.mxu1 %v4425_v28 }
 0x1db   : > { %3834 = vmatprep.subr.bf16.mxu1 %v4652_v24 }
 0x1de   : > { %3835 = vmatpush3.bf16.msra.mxu1 %v4426_v43 }
 0x1df   : > { %3836 = vmatprep.subr.bf16.mxu1 %v4652_v24 }
 0x1e2   : > { %3837 = vmatpush3.bf16.msra.mxu1 %v4427_v44  ;;  %v2340_v44 = vrot.slane %v5331_v42, %v2307_v4 }
 0x1e3   : > { %v4438_v46 = vpop.eup %4437  ;;  %3838 = vmatprep.subr.bf16.mxu1 %v4652_v24 }
 0x1e4   : > { %v4440_v48 = vpop.eup %4439  ;;  %v3131_v49 = vadd.f32 1.0, %v4438_v46  ;;  %v2344_v46 = vrot.slane %v5331_v42, %v2311_v8 }
 0x1e5   : > { %v3132_v50 = vadd.f32 1.0, %v4440_v48 }
 0x1e6   : > { %4441 = vrcp.f32 %v3131_v49  ;;  %3839 = vmatpush3.bf16.msra.mxu1 %v2428_v47 }
 0x1e7   : > { %4443 = vrcp.f32 %v3132_v50 }
 0x1e9   : > { %3841 = vmatmul.mubr.msk.bf16.vlgmr.msra.gmra.mrb[20].mxu1 %vm2380_vm1, %v4917_v38  ;;  %v2328_v38 = vrot.slane %v5215_v7, %v2327_v34 }
 0x1f0   : > { %v4442_v51 = vpop.eup %4441 }
 0x1f1   : > { %v4444_v52 = vpop.eup %4443 }
 0x1f2   : > { %v3190_v53 = vcombine.low %v4442_v51, %v4444_v52 }
 0x1f4   : > { %v3206_v55 = vrot.slane %v3190_v53, %v4899_v27 }
 0x1f6   : > { %v3221_v57 = vcombine.low %v3199_v54, %v3206_v55 }
 0x1f8   : > { %v3229_v29 = vrot.slane %v3221_v57, %v4899_v27 }
 0x1fb   : > { %v2669_v59 = vpop.f32.mrb[4].mxu0 }
 0x1fc   : > { %v3850_v60 = vadd.f32 %v2669_v59, %v2324_v58  ;;  %v2671_v61 = vpop.f32.mrb[5].mxu0 }
 0x1fd   : > { %v3851_v62 = vadd.f32 %v2671_v61, %v2328_v38  ;;  %v2673_v63 = vpop.f32.mrb[6].mxu0  ;;  %v2352_v61 = vrot.slane %v5331_v42, %v2319_v23 }
 0x1fe   : > { %v3780_v1 = vmul.f32 -1.442695, %v3850_v60  ;;  %v2674_v2 = vpop.f32.mrb[7].mxu0  ;;  %v2348_v60 = vrot.slane %v5331_v42, %v2315_v0 }
 0x1ff   : > { %v3781_v3 = vmul.f32 -1.442695, %v3851_v62 }
 0x200   : > { %4445 = vpow2.f32 %v3780_v1 }
 0x201   : > { %4447 = vpow2.f32 %v3781_v3 }
 0x20a   : > { %v4446_v5 = vpop.eup %4445 }
 0x20b   : > { %v4448_v6 = vpop.eup %4447  ;;  %v3133_v9 = vadd.f32 1.0, %v4446_v5 }
 0x20c   : > { %v3134_v10 = vadd.f32 1.0, %v4448_v6 }
 0x20d   : > { %4449 = vrcp.f32 %v3133_v9 }
 0x20e   : > { %4451 = vrcp.f32 %v3134_v10 }
 0x217   : > { %v4450_v11 = vpop.eup %4449 }
 0x218   : > { %v4452_v12 = vpop.eup %4451 }
 0x219   : > { %v3191_v13 = vcombine.low %v4450_v11, %v4452_v12 }
 0x21b   : > { %v3213_v40 = vrot.slane %v3191_v13, %v4899_v27 }
 0x22c   : > { %v2751_v19 = vpop.f32.mrb[8].mxu1 }
 0x22d   : > { %v3852_v21 = vadd.f32 %v2751_v19, %v2332_v17  ;;  %v2753_v22 = vpop.f32.mrb[9].mxu1 }
 0x22e   : > { %v3853_v24 = vadd.f32 %v2753_v22, %v2336_v18  ;;  %v2755_v25 = vpop.f32.mrb[10].mxu1 }
 0x22f   : > { %v3782_v26 = vmul.f32 -1.442695, %v3852_v21  ;;  %v2756_v30 = vpop.f32.mrb[11].mxu1 }
 0x230   : > { %v3783_v31 = vmul.f32 -1.442695, %v3853_v24  ;;  %v2356_v30 = vrot.slane %v5331_v42, %v2323_v56 }
 0x231   : > { %4453 = vpow2.f32 %v3782_v26 }
 0x232   : > { %4455 = vpow2.f32 %v3783_v31  ;;  %v2360_v31 = vrot.slane %v5331_v42, %v2327_v34 }
 0x23b   : > { %v4454_v33 = vpop.eup %4453 }
 0x23c   : > { %v4456_v35 = vpop.eup %4455  ;;  %v3135_v36 = vadd.f32 1.0, %v4454_v33 }
 0x23d   : > { %v3136_v32 = vadd.f32 1.0, %v4456_v35 }
 0x23e   : > { %4457 = vrcp.f32 %v3135_v36 }
 0x23f   : > { %4459 = vrcp.f32 %v3136_v32 }
 0x248   : > { %v4458_v37 = vpop.eup %4457 }
 0x249   : > { %v4460_v7 = vpop.eup %4459 }
 0x24a   : > { %v3192_v39 = vcombine.low %v4458_v37, %v4460_v7 }
 0x24c   : > { %v3220_v28 = vrot.slane %v3192_v39, %v4899_v27 }
 0x24e   : > { %v3222_v41 = vcombine.low %v3213_v40, %v3220_v28  ;;  %v2364_v28 = vrot.slane %v5331_v42, %v2331_v14 }
 0x250   : > { %v3236_v43 = vrot.slane %v3222_v41, %v4899_v27 }
 0x252   : > { %v3237_v45 = vcombine.low %v3229_v29, %v3236_v43 }
 0x253   : > { %v2833_v47 = vpop.f32.mrb[8].mxu0 }
 0x254   : > { %3288 = vst [vmem:[%s5343_s6] sm:$0xff] %v3237_v45  ;;  %v3854_v48 = vadd.f32 %v2833_v47, %v2340_v44  ;;  %v2835_v49 = vpop.f32.mrb[9].mxu0 }
 0x255   : > { %v3855_v50 = vadd.f32 %v2835_v49, %v2344_v46  ;;  %v2837_v51 = vpop.f32.mrb[10].mxu0 }
 0x256   : > { %v3784_v52 = vmul.f32 -1.442695, %v3854_v48  ;;  %v2838_v53 = vpop.f32.mrb[11].mxu0 }
 0x257   : > { %v3785_v54 = vmul.f32 -1.442695, %v3855_v50 }
 0x258   : > { %4461 = vpow2.f32 %v3784_v52 }
 0x259   : > { %4463 = vpow2.f32 %v3785_v54 }
 0x262   : > { %v4462_v4 = vpop.eup %4461 }
 0x263   : > { %v4464_v55 = vpop.eup %4463  ;;  %v3137_v57 = vadd.f32 1.0, %v4462_v4 }
 0x264   : > { %v3138_v58 = vadd.f32 1.0, %v4464_v55 }
 0x265   : > { %4465 = vrcp.f32 %v3137_v57 }
 0x266   : > { %4467 = vrcp.f32 %v3138_v58 }
 0x26f   : > { %v4466_v8 = vpop.eup %4465 }
 0x270   : > { %v4468_v38 = vpop.eup %4467 }
 0x271   : > { %v3238_v59 = vcombine.low %v4466_v8, %v4468_v38 }
 0x273   : > { %v3247_v23 = vrot.slane %v3238_v59, %v4899_v27 }
 0x284   : > { %v2915_v62 = vpop.f32.mrb[12].mxu1 }
 0x285   : > { %v3856_v63 = vadd.f32 %v2915_v62, %v2348_v60  ;;  %v2917_v1 = vpop.f32.mrb[13].mxu1 }
 0x286   : > { %v3857_v2 = vadd.f32 %v2917_v1, %v2352_v61  ;;  %v2919_v3 = vpop.f32.mrb[14].mxu1 }
 0x287   : > { %v3786_v5 = vmul.f32 -1.442695, %v3856_v63  ;;  %v2920_v6 = vpop.f32.mrb[15].mxu1 }
 0x288   : > { %v3787_v9 = vmul.f32 -1.442695, %v3857_v2 }
 0x289   : > { %4469 = vpow2.f32 %v3786_v5 }
 0x28a   : > { %4471 = vpow2.f32 %v3787_v9 }
 0x293   : > { %v4470_v10 = vpop.eup %4469 }
 0x294   : > { %v4472_v11 = vpop.eup %4471  ;;  %v3139_v12 = vadd.f32 1.0, %v4470_v10 }
 0x295   : > { %v3140_v13 = vadd.f32 1.0, %v4472_v11 }
 0x296   : > { %4473 = vrcp.f32 %v3139_v12 }
 0x297   : > { %4475 = vrcp.f32 %v3140_v13 }
 0x2a0   : > { %v4474_v0 = vpop.eup %4473 }
 0x2a1   : > { %v4476_v16 = vpop.eup %4475 }
 0x2a2   : > { %v3239_v17 = vcombine.low %v4474_v0, %v4476_v16 }
 0x2a4   : > { %v3254_v18 = vrot.slane %v3239_v17, %v4899_v27  ;;  %v3815_v19 = vpop.f32.mrb[16].mxu1 }
 0x2a5   : > { %v3816_v21 = vpop.f32.mrb[17].mxu1 }
 0x2a6   : > { %v3269_v22 = vcombine.low %v3247_v23, %v3254_v18  ;;  %v3817_v24 = vadd.f32 %v3816_v21, %v3815_v19  ;;  %v3818_v25 = vpop.f32.mrb[18].mxu1 }
 0x2a7   : > { %v3819_v26 = vpop.f32.mrb[19].mxu1 }
 0x2a8   : > { %v3039_v56 = vadd.f32 %v3817_v24, %v2364_v28  ;;  %v3277_v55 = vrot.slane %v3269_v22, %v4899_v27 }
 0x2ab   : > { %v2997_v33 = vpop.f32.mrb[12].mxu0 }
 0x2ac   : > { %v3858_v35 = vadd.f32 %v2997_v33, %v2356_v30  ;;  %v2999_v36 = vpop.f32.mrb[13].mxu0 }
 0x2ad   : > { %v3859_v32 = vadd.f32 %v2999_v36, %v2360_v31  ;;  %v3001_v37 = vpop.f32.mrb[14].mxu0 }
 0x2ae   : > { %v3788_v7 = vmul.f32 -1.442695, %v3858_v35  ;;  %v3002_v39 = vpop.f32.mrb[15].mxu0 }
 0x2af   : > { %v3789_v40 = vmul.f32 -1.442695, %v3859_v32 }
 0x2b0   : > { %4477 = vpow2.f32 %v3788_v7 }
 0x2b1   : > { %4479 = vpow2.f32 %v3789_v40 }
 0x2ba   : > { %v4478_v41 = vpop.eup %4477 }
 0x2bb   : > { %v4480_v29 = vpop.eup %4479  ;;  %v3141_v43 = vadd.f32 1.0, %v4478_v41 }
 0x2bc   : > { %v3078_v44 = vpop.f32.mrb[20].mxu1  ;;  %v3142_v34 = vadd.f32 1.0, %v4480_v29 }
 0x2bd   : > { %v3079_v45 = vadd.f32 %v3078_v44, %v3039_v56  ;;  %v3842_v46 = vpop.f32.mrb[21].mxu1  ;;  %4481 = vrcp.f32 %v3141_v43 }
 0x2be   : > { %v3081_v47 = vpop.f32.mrb[22].mxu1  ;;  %4483 = vrcp.f32 %v3142_v34 }
 0x2bf   : > { %v3790_v48 = vmul.f32 -1.442695, %v3079_v45  ;;  %v3843_v49 = vpop.f32.mrb[23].mxu1 }
 0x2c1   : > { %4485 = vpow2.f32 %v3790_v48 }
 0x2c7   : > { %v4482_v50 = vpop.eup %4481 }
 0x2c8   : > { %v4484_v20 = vpop.eup %4483 }
 0x2c9   : > { %v3240_v51 = vcombine.low %v4482_v50, %v4484_v20 }
 0x2cb   : > { %v4486_v14 = vpop.eup %4485  ;;  %v3261_v53 = vrot.slane %v3240_v51, %v4899_v27 }
 0x2cc   : > { %v3143_v42 = vadd.f32 1.0, %v4486_v14 }
 0x2ce   : > { %4487 = vrcp.f32 %v3143_v42 }
 0x2d8   : > { %v4488_v52 = vpop.eup %4487 }
 0x2d9   : > { %v3268_v54 = vrot.slane %v4488_v52, %v4899_v27 }
 0x2db   : > { %v3270_v4 = vcombine.low %v3261_v53, %v3268_v54  ;;  %3301 = sbr.rel (!%p5446_p5) target bundleno = 765 (0x2fd), region = 48 }
 0x2dd   : > { %v3284_v57 = vrot.slane %v3270_v4, %v4899_v27 }
 0x2df   : > { %v3285_v58 = vcombine.low %v3277_v55, %v3284_v57 }
 0x2e1   : > { %3293 = vst.msk [vmem:[%s5343_s6 + $0x8] sm:$0x7f] %vm3291_vm3, %v3285_v58 }
 0x2e2   : > { %s5458_s4 = smov (!%p3304_p6, %s3303_s4), 15 }
 0x2e3   : > { %s5373_s5 = sshll.u32 %s5458_s4, 4 }
 0x2e4   : > { %s3308_s7 = ssub.s32 240, %s5373_s5 }
 0x2e5   : > { %3309 = vsyncadd %s3295_s19, %s3308_s7  ;;  %p3792_p11 = scmp.ne.s32.totalorder %s5373_s5, 0  ;;  %s3798_s24 = smul.u32 240, %s4696_s16 }
 0x2e6   : > { %s3314_s8 = sshll.u32 %s5343_s6, 4  ;;  %s4654_s9 = smov [#allocation8]   ;;  %s3315_s8 = int_to_ptr.vmem [resolvable:$true] %s3314_s8 }
 0x2e7   : > { %s5384_s28 = scalar_lea.hbm %s5429_s3, %s3798_s24  ;;  %s4573_s22 = scalar_lea.vmem %s3315_s8, %s5373_s5 }
 0x2e8   : > { %p4574_p13 = scmp.ne.s32.totalorder %s3315_s8, %s4573_s22  ;;  %s4577_s20 = sshll.u32 %s4654_s9, 4  ;;  %s4578_s20 = int_to_ptr.vmem [resolvable:$false] %s4577_s20 }
 0x2e9   : > { %s4579_s17 = scalar_lea.vmem %s4578_s20, 480  ;;  %p4580_p7 = scmp.lt.s32.totalorder %s3315_s8, %s4578_s20 }
 0x2ea   : > { %p4575_p2 = pnand %p4574_p13, %p3792_p11  ;;  %p4581_p8 = scmp.lt.s32.totalorder %s4579_s17, %s4573_s22 }
 0x2ec   : > { %p4576_p12 = pneg %p4575_p2  ;;  %p4582_p9 = por %p4581_p8, %p4580_p7 }
 0x2ee   : > { %p4583_p1 = pnand %p4582_p9, %p4576_p12 }
 0x2f0   : > { %4586 = shalt.err (!%p4583_p1)
}
 0x2f1   : > { %s4587_s16 = scalar_lea.hbm %s5384_s28, %s5373_s5  ;;  %s4591_s26 = scalar_lea.hbm %s5429_s3, 464 }
 0x2f2   : > { %p4588_p10 = scmp.ne.s32.totalorder %s5384_s28, %s4587_s16  ;;  %p4592_p0 = scmp.lt.u32.totalorder %s5384_s28, %s5429_s3 }
 0x2f3   : > { %p4593_p5 = scmp.lt.u32.totalorder %s4591_s26, %s4587_s16  ;;  %p4595_p13 = scmp.lt.u32.totalorder %s4587_s16, %s5384_s28 }
 0x2f4   : > { %p4589_p3 = pnand %p4588_p10, %p3792_p11 }
 0x2f5   : > { %p4594_p6 = por %p4593_p5, %p4592_p0 }
 0x2f6   : > { %p4590_p4 = pneg %p4589_p3 }
 0x2f7   : > { %p4596_p2 = por %p4595_p13, %p4594_p6 }
 0x2f9   : > { %p4597_p12 = pnand %p4596_p2, %p4590_p4 }
 0x2fb   : > { %4600 = shalt.err (!%p4597_p12)
}
 0x2fc   : > { %3317 = dma.vmem_to_hbm [thread:$0]  (%p3792_p11), %s3315_s8, %s5373_s5, %s5384_s28, %s3295_s19  }
 0x2fd PF: > { %s3326_s4 = sand.u32 1, %s4631_s12   ;;  %p5447_p7 = scmp.ne.s32.totalorder %s5437_s25, 0 }
 0x2fe   : > { %p5448_p8 = scmp.ge.s32.totalorder %s4643_s15, 2  ;;  %s3327_s7 = scalar_lea.sflag [#allocation4], %s3326_s4 }
 0x300   : > { %p3900_p9 = pnand %p5448_p8, %p5447_p7 }
 0x302   : > { %4626 = dma.done.wait (!%p3900_p9), %s3327_s7, 240  }
 0x303   : > { %4628 = vsyncadd (!%p3900_p9), %s3327_s7, 4294967056  ;;  %p17_p1 = scmp.ge.s32.totalorder %s4700_s18, 4   ;;  %s5449_s12 = smov %s4635_s13 }
 0x304   : > { %s5450_s13 = smov %s4639_s14  ;;  %s5451_s14 = smov %s4712_s21 }
 0x305   : > { %s5452_s15 = smov %s4700_s18  ;;  %19 = sbr.rel (!%p17_p1) target bundleno = 6 (0x6), region = 93 }
 0x30c   :  { %3332 = vsyncpa [#allocation3], 1 }
 0x30d   :  { %3334 = vsyncpa [#allocation3 + $0x1], 1 }
 0x30e   :  { %3335 = vsyncpa [#allocation6], 1 }
 0x30f   :  { %3337 = vsyncpa [#allocation6 + $0x1], 1 }
 0x310   :  { %3338 = vsyncpa [#allocation4], 1 }
 0x311   :  { %3340 = vsyncpa [#allocation4 + $0x1], 1 }

</bundles_post_ra>
